<compile_context>
chip_gen: v7x
topology: tpu7x:2x2x1
jax: 0.10.0
libtpu: 0.0.40
codegen_flags: <defaults>
</compile_context>

<pallas_src>
import functools

import jax
import jax.numpy as jnp
from jax.experimental import pallas as pl
from jax.experimental.pallas import tpu as pltpu


# Matmul-operand dtype (weights + activations at the dot); accumulation and
# all VPU/EUP work stay float32.  Set to jnp.float32 for bit-exact checking.
MATMUL_DTYPE = jnp.bfloat16


def wavenet_kernel(x_ref, w_in_ref, b_in_ref,
                   wfg_ref, bfg_ref, wsr_ref, bsr_ref,
                   wa1_ref, ba1_ref, wa2_ref, ba2_ref,
                   out_ref, *, dilations):
    f32 = jnp.float32
    cdt = w_in_ref.dtype                       # bf16 (or f32) matmul dtype

    def dot(w, a):                             # W @ A, f32 accumulation on MXU
        return jnp.dot(w, a.astype(cdt), preferred_element_type=f32)

    R = w_in_ref.shape[0]                      # residual channels
    D = wfg_ref.shape[1] // 2                  # dilation channels
    S = wsr_ref.shape[1] - R                   # skip channels
    T_pad = x_ref.shape[2]

    x = x_ref[0]                               # (C_in, T_pad), f32
    w_in, b_in = w_in_ref[...], b_in_ref[...]
    wfg, bfg = wfg_ref[...], bfg_ref[...]      # (L, 2D, 2R), (L, 2D, 1)
    wsr, bsr = wsr_ref[...], bsr_ref[...]      # (L, S+R, D), (L, S+R, 1)

    # in_layer: 1x1 conv
    residual = dot(w_in, x) + b_in             # (R, T_pad) f32
    skip = None

    # Gated dilated-conv layers, statically unrolled with fixed shapes.
    # Only the first T - sum(dilations[:l+1]) lanes are valid after layer l;
    # the padded / wrapped tail is finite garbage that is never read by a
    # valid lane and is sliced off by the wrapper.
    for li, d in enumerate(dilations):
        sh = (-d) % T_pad
        hi = pltpu.roll(residual, shift=sh, axis=1)       # hi[:, t] = res[:, t+d]
        x2 = jnp.concatenate([residual, hi], axis=0)      # (2R, T_pad)

        # One fused matmul for filter+gate, both taps:  (2D, 2R) @ (2R, T_pad)
        pre = dot(wfg[li], x2) + bfg[li]                  # (2D, T_pad)
        sg = jax.nn.sigmoid(pre)                          # single EUP pass
        # filter rows of wfg/bfg were pre-scaled by 2 -> tanh(z) = 2*sig(2z)-1
        gated = (2.0 * sg[:D] - 1.0) * sg[D:]             # (D, T_pad)

        # One fused matmul for skip_squash + residual_squash.
        sr = dot(wsr[li], gated) + bsr[li]                # (S+R, T_pad)
        sn = sr[:S]
        skip = sn if skip is None else sn + pltpu.roll(skip, shift=sh, axis=1)
        residual = sr[S:] + hi

    # agg_layers: ReLU -> 1x1 conv -> ReLU -> 1x1 conv -> softmax over channels
    h = jnp.maximum(skip, 0.0)
    h = jnp.maximum(dot(wa1_ref[...], h) + ba1_ref[...], 0.0)     # (O, T_pad)
    logits = dot(wa2_ref[...], h) + ba2_ref[...]                  # (256, T_pad)
    m = jnp.max(logits, axis=0, keepdims=True)
    e = jnp.exp(logits - m)
    denom = jnp.sum(e, axis=0, keepdims=True)
    out_ref[0] = e * pl.reciprocal(denom, approx=False)


def wavenet_forward(x_nct, packed, dilations):
    """x_nct: (N, C_in, T) float32 in PyTorch NCT layout -> (N, 256, T_out)."""
    N, C_in, T = x_nct.shape
    T_out = T - sum(dilations)
    T_pad = ((T + 127) // 128) * 128           # lane-dense time axis
    n_final = packed["wa2"].shape[0]           # 256

    x = jnp.pad(x_nct.astype(jnp.float32), ((0, 0), (0, 0), (0, T_pad - T)))

    inputs = [x,
              packed["w_in"], packed["b_in"],
              packed["wfg"], packed["bfg"],
              packed["wsr"], packed["bsr"],
              packed["wa1"], packed["ba1"],
              packed["wa2"], packed["ba2"]]

    def full_spec(a):
        nd = a.ndim
        return pl.BlockSpec(a.shape, lambda b, _nd=nd: (0,) * _nd)

    in_specs = ([pl.BlockSpec((1, C_in, T_pad), lambda b: (b, 0, 0))]
                + [full_spec(a) for a in inputs[1:]])
    out_spec = pl.BlockSpec((1, n_final, T_pad), lambda b: (b, 0, 0))

    # VMEM budget: double-buffered x/out blocks + weights + layer temporaries.
    blk_bytes = (sum(int(a.size) * a.dtype.itemsize for a in inputs[1:])
                 + (C_in + n_final) * T_pad * 4)
    vmem_limit = int(min(64 << 20, max(16 << 20, 4 * blk_bytes + (4 << 20))))

    kernel = functools.partial(wavenet_kernel, dilations=tuple(dilations))
    out = pl.pallas_call(
        kernel,
        out_shape=jax.ShapeDtypeStruct((N, n_final, T_pad), jnp.float32),
        grid=(N,),
        in_specs=in_specs,
        out_specs=out_spec,
        compiler_params=pltpu.CompilerParams(
            dimension_semantics=("parallel",),      # batch -> 2 TCs on v7x
            vmem_limit_bytes=vmem_limit),
    )(*inputs)
    return out[:, :, :T_out]                   # drop padded tail columns


def init_params(key, n_input_channels, n_blocks, n_layers_per_block,
                n_dilation_channels, n_skip_channels, n_residual_channels,
                n_out_channels):
    """Deterministic synthetic parameters in PyTorch Conv1d shapes."""
    C, R = n_input_channels, n_residual_channels
    D, S, O = n_dilation_channels, n_skip_channels, n_out_channels
    L = n_blocks * n_layers_per_block
    ks = jax.random.split(key, 14)
    scale = 0.1

    def rnd(k, shape):
        return scale * jax.random.normal(k, shape, dtype=jnp.float32)

    return dict(
        in_w=rnd(ks[0], (R, C, 1)),        in_b=rnd(ks[1], (R,)),
        filter_w=rnd(ks[2], (L, D, R, 2)), filter_b=rnd(ks[3], (L, D)),
        gate_w=rnd(ks[4], (L, D, R, 2)),   gate_b=rnd(ks[5], (L, D)),
        skip_w=rnd(ks[6], (L, S, D, 1)),   skip_b=rnd(ks[7], (L, S)),
        res_w=rnd(ks[8], (L, R, D, 1)),    res_b=rnd(ks[9], (L, R)),
        agg1_w=rnd(ks[10], (O, S, 1)),     agg1_b=rnd(ks[11], (O,)),
        agg2_w=rnd(ks[12], (256, O, 1)),   agg2_b=rnd(ks[13], (256,)),
    )


def pack_params(params, matmul_dtype=MATMUL_DTYPE):
    """Pack PyTorch-shaped params into fused, matmul-ready kernel weights."""
    f32 = jnp.float32
    wf, wg = params["filter_w"], params["gate_w"]          # (L, D, R, 2)
    # Fused filter+gate weights: rows = [2*filter ; gate] outputs,
    # cols = [tap0 (x[t]) ; tap1 (x[t+d])] inputs.  The factor 2 lets the
    # kernel recover tanh from the shared sigmoid pass: tanh(z) = 2*sig(2z)-1.
    wfg = jnp.concatenate(
        [2.0 * jnp.concatenate([wf[..., 0], wf[..., 1]], axis=-1),
         jnp.concatenate([wg[..., 0], wg[..., 1]], axis=-1)], axis=1)
    bfg = jnp.concatenate([2.0 * params["filter_b"], params["gate_b"]],
                          axis=1)[..., None]
    # Fused skip_squash + residual_squash 1x1 weights.
    wsr = jnp.concatenate([params["skip_w"][..., 0],
                           params["res_w"][..., 0]], axis=1)
    bsr = jnp.concatenate([params["skip_b"], params["res_b"]],
                          axis=1)[..., None]
    return dict(
        w_in=params["in_w"][:, :, 0].astype(matmul_dtype),
        b_in=params["in_b"][:, None].astype(f32),
        wfg=wfg.astype(matmul_dtype), bfg=bfg.astype(f32),
        wsr=wsr.astype(matmul_dtype), bsr=bsr.astype(f32),
        wa1=params["agg1_w"][:, :, 0].astype(matmul_dtype),
        ba1=params["agg1_b"][:, None].astype(f32),
        wa2=params["agg2_w"][:, :, 0].astype(matmul_dtype),
        ba2=params["agg2_b"][:, None].astype(f32),
    )


def wavenet_reference(x_nct, params, dilations):
    """Pure-JAX f32 reference mirroring the PyTorch forward, for verification."""
    x = x_nct.astype(jnp.float32)

    def conv1x1(h, w, b):                     # h: (N,Cin,T), w: (Cout,Cin,1)
        return jnp.einsum('oc,nct->not', w[:, :, 0], h) + b[None, :, None]

    residual = conv1x1(x, params["in_w"], params["in_b"])
    skip = None
    for li, d in enumerate(dilations):
        lo, hi = residual[:, :, :-d], residual[:, :, d:]
        wf, bf = params["filter_w"][li], params["filter_b"][li]
        wg, bg = params["gate_w"][li], params["gate_b"][li]
        f = (jnp.einsum('oc,nct->not', wf[:, :, 0], lo)
             + jnp.einsum('oc,nct->not', wf[:, :, 1], hi) + bf[None, :, None])
        g = (jnp.einsum('oc,nct->not', wg[:, :, 0], lo)
             + jnp.einsum('oc,nct->not', wg[:, :, 1], hi) + bg[None, :, None])
        gated = jnp.tanh(f) * jax.nn.sigmoid(g)
        sk = conv1x1(gated, params["skip_w"][li], params["skip_b"][li])
        skip = sk if skip is None else sk + skip[:, :, d:]
        residual = conv1x1(gated, params["res_w"][li], params["res_b"][li]) + hi
    h = jnp.maximum(skip, 0.0)
    h = jnp.maximum(conv1x1(h, params["agg1_w"], params["agg1_b"]), 0.0)
    logits = conv1x1(h, params["agg2_w"], params["agg2_b"])
    return jax.nn.softmax(logits, axis=1)


if __name__ == "__main__":
    # Small config consistent with the module (defaults scaled down); the
    # final conv to 256 output channels is kept, matching the hardcoded head.
    n_input_channels = 16
    n_blocks = 2
    n_layers_per_block = 3
    n_dilation_channels = 8
    n_skip_channels = 8
    n_residual_channels = 8
    n_out_channels = 16
    N, T = 2, 32

    dilations = [2 ** i for _ in range(n_blocks) for i in range(n_layers_per_block)]
    T_out = T - sum(dilations)   # 32 - 14 = 18

    key = jax.random.PRNGKey(0)
    kp, kx = jax.random.split(key)
    params = init_params(kp, n_input_channels, n_blocks, n_layers_per_block,
                         n_dilation_channels, n_skip_channels,
                         n_residual_channels, n_out_channels)
    packed = pack_params(params)
    x = jax.random.normal(kx, (N, n_input_channels, T), dtype=jnp.float32)

    out = wavenet_forward(x, packed, dilations)
    out = jax.block_until_ready(out)

    assert out.shape == (N, 256, T_out), out.shape
    ref = wavenet_reference(x, params, dilations)
    max_err = float(jnp.max(jnp.abs(out - ref)))
    # bf16 matmul operands (f32 accumulation) -> small deviation vs f32 ref.
    assert jnp.allclose(out, ref, atol=2e-3, rtol=2e-2), max_err
    # softmax rows sum to 1 over the channel dim
    assert jnp.allclose(jnp.sum(out, axis=1), 1.0, atol=1e-4)

    print("KERNEL_OK")
</pallas_src>

<mosaic_0001>
module attributes {stable_mosaic.version = 11 : i64} {
  func.func @wavenet_kernel(%arg0: i32, %arg1: memref<1x16x128xf32, #tpu.memory_space<vmem>>, %arg2: memref<8x16xbf16, #tpu.memory_space<vmem>>, %arg3: memref<8x1xf32, #tpu.memory_space<vmem>>, %arg4: memref<6x16x16xbf16, #tpu.memory_space<vmem>>, %arg5: memref<6x16x1xf32, #tpu.memory_space<vmem>>, %arg6: memref<6x16x8xbf16, #tpu.memory_space<vmem>>, %arg7: memref<6x16x1xf32, #tpu.memory_space<vmem>>, %arg8: memref<16x8xbf16, #tpu.memory_space<vmem>>, %arg9: memref<16x1xf32, #tpu.memory_space<vmem>>, %arg10: memref<256x16xbf16, #tpu.memory_space<vmem>>, %arg11: memref<256x1xf32, #tpu.memory_space<vmem>>, %arg12: memref<1x256x128xf32, #tpu.memory_space<vmem>>) attributes {dimension_semantics = [#tpu.dimension_semantics<parallel>], iteration_bounds = array<i64: 2>, scalar_prefetch = 0 : i64, scratch_operands = 0 : i64, tpu.core_type = #tpu.core_type<tc>, window_params = [{transform_indices = @transform_0, window_bounds = array<i64: 1, 16, 128>}, {pipeline_mode = #tpu.pipeline_mode<synchronous>, transform_indices = @transform_1, window_bounds = array<i64: 8, 16>}, {pipeline_mode = #tpu.pipeline_mode<synchronous>, transform_indices = @transform_2, window_bounds = array<i64: 8, 1>}, {pipeline_mode = #tpu.pipeline_mode<synchronous>, transform_indices = @transform_3, window_bounds = array<i64: 6, 16, 16>}, {pipeline_mode = #tpu.pipeline_mode<synchronous>, transform_indices = @transform_4, window_bounds = array<i64: 6, 16, 1>}, {pipeline_mode = #tpu.pipeline_mode<synchronous>, transform_indices = @transform_5, window_bounds = array<i64: 6, 16, 8>}, {pipeline_mode = #tpu.pipeline_mode<synchronous>, transform_indices = @transform_6, window_bounds = array<i64: 6, 16, 1>}, {pipeline_mode = #tpu.pipeline_mode<synchronous>, transform_indices = @transform_7, window_bounds = array<i64: 16, 8>}, {pipeline_mode = #tpu.pipeline_mode<synchronous>, transform_indices = @transform_8, window_bounds = array<i64: 16, 1>}, {pipeline_mode = #tpu.pipeline_mode<synchronous>, transform_indices = @transform_9, window_bounds = array<i64: 256, 16>}, {pipeline_mode = #tpu.pipeline_mode<synchronous>, transform_indices = @transform_10, window_bounds = array<i64: 256, 1>}, {transform_indices = @transform_11, window_bounds = array<i64: 1, 256, 128>}]} {
    %c0 = arith.constant 0 : index
    %c0_0 = arith.constant 0 : index
    %c0_1 = arith.constant 0 : index
    %0 = vector.load %arg1[%c0, %c0_0, %c0_1] : memref<1x16x128xf32, #tpu.memory_space<vmem>>, vector<1x16x128xf32>
    %1 = vector.shape_cast %0 : vector<1x16x128xf32> to vector<16x128xf32>
    %c0_2 = arith.constant 0 : index
    %c0_3 = arith.constant 0 : index
    %2 = vector.load %arg2[%c0_2, %c0_3] : memref<8x16xbf16, #tpu.memory_space<vmem>>, vector<8x16xbf16>
    %c0_4 = arith.constant 0 : index
    %c0_5 = arith.constant 0 : index
    %3 = vector.load %arg3[%c0_4, %c0_5] : memref<8x1xf32, #tpu.memory_space<vmem>>, vector<8x1xf32>
    %c0_6 = arith.constant 0 : index
    %c0_7 = arith.constant 0 : index
    %c0_8 = arith.constant 0 : index
    %4 = vector.load %arg4[%c0_6, %c0_7, %c0_8] : memref<6x16x16xbf16, #tpu.memory_space<vmem>>, vector<6x16x16xbf16>
    %c0_9 = arith.constant 0 : index
    %c0_10 = arith.constant 0 : index
    %c0_11 = arith.constant 0 : index
    %5 = vector.load %arg5[%c0_9, %c0_10, %c0_11] : memref<6x16x1xf32, #tpu.memory_space<vmem>>, vector<6x16x1xf32>
    %c0_12 = arith.constant 0 : index
    %c0_13 = arith.constant 0 : index
    %c0_14 = arith.constant 0 : index
    %6 = vector.load %arg6[%c0_12, %c0_13, %c0_14] : memref<6x16x8xbf16, #tpu.memory_space<vmem>>, vector<6x16x8xbf16>
    %c0_15 = arith.constant 0 : index
    %c0_16 = arith.constant 0 : index
    %c0_17 = arith.constant 0 : index
    %7 = vector.load %arg7[%c0_15, %c0_16, %c0_17] : memref<6x16x1xf32, #tpu.memory_space<vmem>>, vector<6x16x1xf32>
    %8 = arith.truncf %1 : vector<16x128xf32> to vector<16x128xbf16>
    %cst = arith.constant dense<0.000000e+00> : vector<8x128xf32>
    %9 = tpu.matmul %2, %8, %cst {dimension_numbers = #tpu.dot_dimension_numbers<[1], [0], [0], [1], [0, 0, 1, 1], [], []>} : vector<8x16xbf16>, vector<16x128xbf16>, vector<8x128xf32> -> vector<8x128xf32>
    %10 = vector.broadcast %3 : vector<8x1xf32> to vector<8x128xf32>
    %11 = arith.addf %9, %10 : vector<8x128xf32>
    %c127_i32 = arith.constant 127 : i32
    %12 = tpu.dynamic_rotate %11 by %c127_i32 dim 1 : vector<8x128xf32>, i32 -> vector<8x128xf32>
    %13 = tpu.concatenate %11, %12 in 0 : vector<8x128xf32>, vector<8x128xf32> -> vector<16x128xf32>
    %14 = vector.extract_strided_slice %4 {offsets = [0, 0, 0], sizes = [1, 16, 16], strides = [1, 1, 1]} : vector<6x16x16xbf16> to vector<1x16x16xbf16>
    %15 = vector.shape_cast %14 : vector<1x16x16xbf16> to vector<16x16xbf16>
    %16 = arith.truncf %13 : vector<16x128xf32> to vector<16x128xbf16>
    %cst_18 = arith.constant dense<0.000000e+00> : vector<16x128xf32>
    %17 = tpu.matmul %15, %16, %cst_18 {dimension_numbers = #tpu.dot_dimension_numbers<[1], [0], [0], [1], [0, 0, 1, 1], [], []>} : vector<16x16xbf16>, vector<16x128xbf16>, vector<16x128xf32> -> vector<16x128xf32>
    %18 = vector.extract_strided_slice %5 {offsets = [0, 0, 0], sizes = [1, 16, 1], strides = [1, 1, 1]} : vector<6x16x1xf32> to vector<1x16x1xf32>
    %19 = vector.shape_cast %18 : vector<1x16x1xf32> to vector<16x1xf32>
    %20 = vector.broadcast %19 : vector<16x1xf32> to vector<16x128xf32>
    %21 = arith.addf %17, %20 : vector<16x128xf32>
    %22 = arith.negf %21 : vector<16x128xf32>
    %23 = math.exp %22 : vector<16x128xf32>
    %cst_19 = arith.constant 1.000000e+00 : f32
    %24 = vector.broadcast %cst_19 : f32 to vector<16x128xf32>
    %25 = arith.addf %24, %23 : vector<16x128xf32>
    %26 = arith.divf %24, %25 : vector<16x128xf32>
    %27 = vector.extract_strided_slice %26 {offsets = [0, 0], sizes = [8, 128], strides = [1, 1]} : vector<16x128xf32> to vector<8x128xf32>
    %cst_20 = arith.constant 2.000000e+00 : f32
    %28 = vector.broadcast %cst_20 : f32 to vector<8x128xf32>
    %29 = arith.mulf %28, %27 : vector<8x128xf32>
    %cst_21 = arith.constant 1.000000e+00 : f32
    %30 = vector.broadcast %cst_21 : f32 to vector<8x128xf32>
    %31 = arith.subf %29, %30 : vector<8x128xf32>
    %32 = vector.extract_strided_slice %26 {offsets = [8, 0], sizes = [8, 128], strides = [1, 1]} : vector<16x128xf32> to vector<8x128xf32>
    %33 = arith.mulf %31, %32 : vector<8x128xf32>
    %34 = vector.extract_strided_slice %6 {offsets = [0, 0, 0], sizes = [1, 16, 8], strides = [1, 1, 1]} : vector<6x16x8xbf16> to vector<1x16x8xbf16>
    %35 = vector.shape_cast %34 : vector<1x16x8xbf16> to vector<16x8xbf16>
    %36 = arith.truncf %33 : vector<8x128xf32> to vector<8x128xbf16>
    %cst_22 = arith.constant dense<0.000000e+00> : vector<16x128xf32>
    %37 = tpu.matmul %35, %36, %cst_22 {dimension_numbers = #tpu.dot_dimension_numbers<[1], [0], [0], [1], [0, 0, 1, 1], [], []>} : vector<16x8xbf16>, vector<8x128xbf16>, vector<16x128xf32> -> vector<16x128xf32>
    %38 = vector.extract_strided_slice %7 {offsets = [0, 0, 0], sizes = [1, 16, 1], strides = [1, 1, 1]} : vector<6x16x1xf32> to vector<1x16x1xf32>
    %39 = vector.shape_cast %38 : vector<1x16x1xf32> to vector<16x1xf32>
    %40 = vector.broadcast %39 : vector<16x1xf32> to vector<16x128xf32>
    %41 = arith.addf %37, %40 : vector<16x128xf32>
    %42 = vector.extract_strided_slice %41 {offsets = [0, 0], sizes = [8, 128], strides = [1, 1]} : vector<16x128xf32> to vector<8x128xf32>
    %43 = vector.extract_strided_slice %41 {offsets = [8, 0], sizes = [8, 128], strides = [1, 1]} : vector<16x128xf32> to vector<8x128xf32>
    %44 = arith.addf %43, %12 : vector<8x128xf32>
    %c126_i32 = arith.constant 126 : i32
    %45 = tpu.dynamic_rotate %44 by %c126_i32 dim 1 : vector<8x128xf32>, i32 -> vector<8x128xf32>
    %46 = tpu.concatenate %44, %45 in 0 : vector<8x128xf32>, vector<8x128xf32> -> vector<16x128xf32>
    %47 = vector.extract_strided_slice %4 {offsets = [1, 0, 0], sizes = [1, 16, 16], strides = [1, 1, 1]} : vector<6x16x16xbf16> to vector<1x16x16xbf16>
    %48 = vector.shape_cast %47 : vector<1x16x16xbf16> to vector<16x16xbf16>
    %49 = arith.truncf %46 : vector<16x128xf32> to vector<16x128xbf16>
    %cst_23 = arith.constant dense<0.000000e+00> : vector<16x128xf32>
    %50 = tpu.matmul %48, %49, %cst_23 {dimension_numbers = #tpu.dot_dimension_numbers<[1], [0], [0], [1], [0, 0, 1, 1], [], []>} : vector<16x16xbf16>, vector<16x128xbf16>, vector<16x128xf32> -> vector<16x128xf32>
    %51 = vector.extract_strided_slice %5 {offsets = [1, 0, 0], sizes = [1, 16, 1], strides = [1, 1, 1]} : vector<6x16x1xf32> to vector<1x16x1xf32>
    %52 = vector.shape_cast %51 : vector<1x16x1xf32> to vector<16x1xf32>
    %53 = vector.broadcast %52 : vector<16x1xf32> to vector<16x128xf32>
    %54 = arith.addf %50, %53 : vector<16x128xf32>
    %55 = arith.negf %54 : vector<16x128xf32>
    %56 = math.exp %55 : vector<16x128xf32>
    %cst_24 = arith.constant 1.000000e+00 : f32
    %57 = vector.broadcast %cst_24 : f32 to vector<16x128xf32>
    %58 = arith.addf %57, %56 : vector<16x128xf32>
    %59 = arith.divf %57, %58 : vector<16x128xf32>
    %60 = vector.extract_strided_slice %59 {offsets = [0, 0], sizes = [8, 128], strides = [1, 1]} : vector<16x128xf32> to vector<8x128xf32>
    %cst_25 = arith.constant 2.000000e+00 : f32
    %61 = vector.broadcast %cst_25 : f32 to vector<8x128xf32>
    %62 = arith.mulf %61, %60 : vector<8x128xf32>
    %cst_26 = arith.constant 1.000000e+00 : f32
    %63 = vector.broadcast %cst_26 : f32 to vector<8x128xf32>
    %64 = arith.subf %62, %63 : vector<8x128xf32>
    %65 = vector.extract_strided_slice %59 {offsets = [8, 0], sizes = [8, 128], strides = [1, 1]} : vector<16x128xf32> to vector<8x128xf32>
    %66 = arith.mulf %64, %65 : vector<8x128xf32>
    %67 = vector.extract_strided_slice %6 {offsets = [1, 0, 0], sizes = [1, 16, 8], strides = [1, 1, 1]} : vector<6x16x8xbf16> to vector<1x16x8xbf16>
    %68 = vector.shape_cast %67 : vector<1x16x8xbf16> to vector<16x8xbf16>
    %69 = arith.truncf %66 : vector<8x128xf32> to vector<8x128xbf16>
    %cst_27 = arith.constant dense<0.000000e+00> : vector<16x128xf32>
    %70 = tpu.matmul %68, %69, %cst_27 {dimension_numbers = #tpu.dot_dimension_numbers<[1], [0], [0], [1], [0, 0, 1, 1], [], []>} : vector<16x8xbf16>, vector<8x128xbf16>, vector<16x128xf32> -> vector<16x128xf32>
    %71 = vector.extract_strided_slice %7 {offsets = [1, 0, 0], sizes = [1, 16, 1], strides = [1, 1, 1]} : vector<6x16x1xf32> to vector<1x16x1xf32>
    %72 = vector.shape_cast %71 : vector<1x16x1xf32> to vector<16x1xf32>
    %73 = vector.broadcast %72 : vector<16x1xf32> to vector<16x128xf32>
    %74 = arith.addf %70, %73 : vector<16x128xf32>
    %75 = vector.extract_strided_slice %74 {offsets = [0, 0], sizes = [8, 128], strides = [1, 1]} : vector<16x128xf32> to vector<8x128xf32>
    %c126_i32_28 = arith.constant 126 : i32
    %76 = tpu.dynamic_rotate %42 by %c126_i32_28 dim 1 : vector<8x128xf32>, i32 -> vector<8x128xf32>
    %77 = arith.addf %75, %76 : vector<8x128xf32>
    %78 = vector.extract_strided_slice %74 {offsets = [8, 0], sizes = [8, 128], strides = [1, 1]} : vector<16x128xf32> to vector<8x128xf32>
    %79 = arith.addf %78, %45 : vector<8x128xf32>
    %c124_i32 = arith.constant 124 : i32
    %80 = tpu.dynamic_rotate %79 by %c124_i32 dim 1 : vector<8x128xf32>, i32 -> vector<8x128xf32>
    %81 = tpu.concatenate %79, %80 in 0 : vector<8x128xf32>, vector<8x128xf32> -> vector<16x128xf32>
    %82 = vector.extract_strided_slice %4 {offsets = [2, 0, 0], sizes = [1, 16, 16], strides = [1, 1, 1]} : vector<6x16x16xbf16> to vector<1x16x16xbf16>
    %83 = vector.shape_cast %82 : vector<1x16x16xbf16> to vector<16x16xbf16>
    %84 = arith.truncf %81 : vector<16x128xf32> to vector<16x128xbf16>
    %cst_29 = arith.constant dense<0.000000e+00> : vector<16x128xf32>
    %85 = tpu.matmul %83, %84, %cst_29 {dimension_numbers = #tpu.dot_dimension_numbers<[1], [0], [0], [1], [0, 0, 1, 1], [], []>} : vector<16x16xbf16>, vector<16x128xbf16>, vector<16x128xf32> -> vector<16x128xf32>
    %86 = vector.extract_strided_slice %5 {offsets = [2, 0, 0], sizes = [1, 16, 1], strides = [1, 1, 1]} : vector<6x16x1xf32> to vector<1x16x1xf32>
    %87 = vector.shape_cast %86 : vector<1x16x1xf32> to vector<16x1xf32>
    %88 = vector.broadcast %87 : vector<16x1xf32> to vector<16x128xf32>
    %89 = arith.addf %85, %88 : vector<16x128xf32>
    %90 = arith.negf %89 : vector<16x128xf32>
    %91 = math.exp %90 : vector<16x128xf32>
    %cst_30 = arith.constant 1.000000e+00 : f32
    %92 = vector.broadcast %cst_30 : f32 to vector<16x128xf32>
    %93 = arith.addf %92, %91 : vector<16x128xf32>
    %94 = arith.divf %92, %93 : vector<16x128xf32>
    %95 = vector.extract_strided_slice %94 {offsets = [0, 0], sizes = [8, 128], strides = [1, 1]} : vector<16x128xf32> to vector<8x128xf32>
    %cst_31 = arith.constant 2.000000e+00 : f32
    %96 = vector.broadcast %cst_31 : f32 to vector<8x128xf32>
    %97 = arith.mulf %96, %95 : vector<8x128xf32>
    %cst_32 = arith.constant 1.000000e+00 : f32
    %98 = vector.broadcast %cst_32 : f32 to vector<8x128xf32>
    %99 = arith.subf %97, %98 : vector<8x128xf32>
    %100 = vector.extract_strided_slice %94 {offsets = [8, 0], sizes = [8, 128], strides = [1, 1]} : vector<16x128xf32> to vector<8x128xf32>
    %101 = arith.mulf %99, %100 : vector<8x128xf32>
    %102 = vector.extract_strided_slice %6 {offsets = [2, 0, 0], sizes = [1, 16, 8], strides = [1, 1, 1]} : vector<6x16x8xbf16> to vector<1x16x8xbf16>
    %103 = vector.shape_cast %102 : vector<1x16x8xbf16> to vector<16x8xbf16>
    %104 = arith.truncf %101 : vector<8x128xf32> to vector<8x128xbf16>
    %cst_33 = arith.constant dense<0.000000e+00> : vector<16x128xf32>
    %105 = tpu.matmul %103, %104, %cst_33 {dimension_numbers = #tpu.dot_dimension_numbers<[1], [0], [0], [1], [0, 0, 1, 1], [], []>} : vector<16x8xbf16>, vector<8x128xbf16>, vector<16x128xf32> -> vector<16x128xf32>
    %106 = vector.extract_strided_slice %7 {offsets = [2, 0, 0], sizes = [1, 16, 1], strides = [1, 1, 1]} : vector<6x16x1xf32> to vector<1x16x1xf32>
    %107 = vector.shape_cast %106 : vector<1x16x1xf32> to vector<16x1xf32>
    %108 = vector.broadcast %107 : vector<16x1xf32> to vector<16x128xf32>
    %109 = arith.addf %105, %108 : vector<16x128xf32>
    %110 = vector.extract_strided_slice %109 {offsets = [0, 0], sizes = [8, 128], strides = [1, 1]} : vector<16x128xf32> to vector<8x128xf32>
    %c124_i32_34 = arith.constant 124 : i32
    %111 = tpu.dynamic_rotate %77 by %c124_i32_34 dim 1 : vector<8x128xf32>, i32 -> vector<8x128xf32>
    %112 = arith.addf %110, %111 : vector<8x128xf32>
    %113 = vector.extract_strided_slice %109 {offsets = [8, 0], sizes = [8, 128], strides = [1, 1]} : vector<16x128xf32> to vector<8x128xf32>
    %114 = arith.addf %113, %80 : vector<8x128xf32>
    %c127_i32_35 = arith.constant 127 : i32
    %115 = tpu.dynamic_rotate %114 by %c127_i32_35 dim 1 : vector<8x128xf32>, i32 -> vector<8x128xf32>
    %116 = tpu.concatenate %114, %115 in 0 : vector<8x128xf32>, vector<8x128xf32> -> vector<16x128xf32>
    %117 = vector.extract_strided_slice %4 {offsets = [3, 0, 0], sizes = [1, 16, 16], strides = [1, 1, 1]} : vector<6x16x16xbf16> to vector<1x16x16xbf16>
    %118 = vector.shape_cast %117 : vector<1x16x16xbf16> to vector<16x16xbf16>
    %119 = arith.truncf %116 : vector<16x128xf32> to vector<16x128xbf16>
    %cst_36 = arith.constant dense<0.000000e+00> : vector<16x128xf32>
    %120 = tpu.matmul %118, %119, %cst_36 {dimension_numbers = #tpu.dot_dimension_numbers<[1], [0], [0], [1], [0, 0, 1, 1], [], []>} : vector<16x16xbf16>, vector<16x128xbf16>, vector<16x128xf32> -> vector<16x128xf32>
    %121 = vector.extract_strided_slice %5 {offsets = [3, 0, 0], sizes = [1, 16, 1], strides = [1, 1, 1]} : vector<6x16x1xf32> to vector<1x16x1xf32>
    %122 = vector.shape_cast %121 : vector<1x16x1xf32> to vector<16x1xf32>
    %123 = vector.broadcast %122 : vector<16x1xf32> to vector<16x128xf32>
    %124 = arith.addf %120, %123 : vector<16x128xf32>
    %125 = arith.negf %124 : vector<16x128xf32>
    %126 = math.exp %125 : vector<16x128xf32>
    %cst_37 = arith.constant 1.000000e+00 : f32
    %127 = vector.broadcast %cst_37 : f32 to vector<16x128xf32>
    %128 = arith.addf %127, %126 : vector<16x128xf32>
    %129 = arith.divf %127, %128 : vector<16x128xf32>
    %130 = vector.extract_strided_slice %129 {offsets = [0, 0], sizes = [8, 128], strides = [1, 1]} : vector<16x128xf32> to vector<8x128xf32>
    %cst_38 = arith.constant 2.000000e+00 : f32
    %131 = vector.broadcast %cst_38 : f32 to vector<8x128xf32>
    %132 = arith.mulf %131, %130 : vector<8x128xf32>
    %cst_39 = arith.constant 1.000000e+00 : f32
    %133 = vector.broadcast %cst_39 : f32 to vector<8x128xf32>
    %134 = arith.subf %132, %133 : vector<8x128xf32>
    %135 = vector.extract_strided_slice %129 {offsets = [8, 0], sizes = [8, 128], strides = [1, 1]} : vector<16x128xf32> to vector<8x128xf32>
    %136 = arith.mulf %134, %135 : vector<8x128xf32>
    %137 = vector.extract_strided_slice %6 {offsets = [3, 0, 0], sizes = [1, 16, 8], strides = [1, 1, 1]} : vector<6x16x8xbf16> to vector<1x16x8xbf16>
    %138 = vector.shape_cast %137 : vector<1x16x8xbf16> to vector<16x8xbf16>
    %139 = arith.truncf %136 : vector<8x128xf32> to vector<8x128xbf16>
    %cst_40 = arith.constant dense<0.000000e+00> : vector<16x128xf32>
    %140 = tpu.matmul %138, %139, %cst_40 {dimension_numbers = #tpu.dot_dimension_numbers<[1], [0], [0], [1], [0, 0, 1, 1], [], []>} : vector<16x8xbf16>, vector<8x128xbf16>, vector<16x128xf32> -> vector<16x128xf32>
    %141 = vector.extract_strided_slice %7 {offsets = [3, 0, 0], sizes = [1, 16, 1], strides = [1, 1, 1]} : vector<6x16x1xf32> to vector<1x16x1xf32>
    %142 = vector.shape_cast %141 : vector<1x16x1xf32> to vector<16x1xf32>
    %143 = vector.broadcast %142 : vector<16x1xf32> to vector<16x128xf32>
    %144 = arith.addf %140, %143 : vector<16x128xf32>
    %145 = vector.extract_strided_slice %144 {offsets = [0, 0], sizes = [8, 128], strides = [1, 1]} : vector<16x128xf32> to vector<8x128xf32>
    %c127_i32_41 = arith.constant 127 : i32
    %146 = tpu.dynamic_rotate %112 by %c127_i32_41 dim 1 : vector<8x128xf32>, i32 -> vector<8x128xf32>
    %147 = arith.addf %145, %146 : vector<8x128xf32>
    %148 = vector.extract_strided_slice %144 {offsets = [8, 0], sizes = [8, 128], strides = [1, 1]} : vector<16x128xf32> to vector<8x128xf32>
    %149 = arith.addf %148, %115 : vector<8x128xf32>
    %c126_i32_42 = arith.constant 126 : i32
    %150 = tpu.dynamic_rotate %149 by %c126_i32_42 dim 1 : vector<8x128xf32>, i32 -> vector<8x128xf32>
    %151 = tpu.concatenate %149, %150 in 0 : vector<8x128xf32>, vector<8x128xf32> -> vector<16x128xf32>
    %152 = vector.extract_strided_slice %4 {offsets = [4, 0, 0], sizes = [1, 16, 16], strides = [1, 1, 1]} : vector<6x16x16xbf16> to vector<1x16x16xbf16>
    %153 = vector.shape_cast %152 : vector<1x16x16xbf16> to vector<16x16xbf16>
    %154 = arith.truncf %151 : vector<16x128xf32> to vector<16x128xbf16>
    %cst_43 = arith.constant dense<0.000000e+00> : vector<16x128xf32>
    %155 = tpu.matmul %153, %154, %cst_43 {dimension_numbers = #tpu.dot_dimension_numbers<[1], [0], [0], [1], [0, 0, 1, 1], [], []>} : vector<16x16xbf16>, vector<16x128xbf16>, vector<16x128xf32> -> vector<16x128xf32>
    %156 = vector.extract_strided_slice %5 {offsets = [4, 0, 0], sizes = [1, 16, 1], strides = [1, 1, 1]} : vector<6x16x1xf32> to vector<1x16x1xf32>
    %157 = vector.shape_cast %156 : vector<1x16x1xf32> to vector<16x1xf32>
    %158 = vector.broadcast %157 : vector<16x1xf32> to vector<16x128xf32>
    %159 = arith.addf %155, %158 : vector<16x128xf32>
    %160 = arith.negf %159 : vector<16x128xf32>
    %161 = math.exp %160 : vector<16x128xf32>
    %cst_44 = arith.constant 1.000000e+00 : f32
    %162 = vector.broadcast %cst_44 : f32 to vector<16x128xf32>
    %163 = arith.addf %162, %161 : vector<16x128xf32>
    %164 = arith.divf %162, %163 : vector<16x128xf32>
    %165 = vector.extract_strided_slice %164 {offsets = [0, 0], sizes = [8, 128], strides = [1, 1]} : vector<16x128xf32> to vector<8x128xf32>
    %cst_45 = arith.constant 2.000000e+00 : f32
    %166 = vector.broadcast %cst_45 : f32 to vector<8x128xf32>
    %167 = arith.mulf %166, %165 : vector<8x128xf32>
    %cst_46 = arith.constant 1.000000e+00 : f32
    %168 = vector.broadcast %cst_46 : f32 to vector<8x128xf32>
    %169 = arith.subf %167, %168 : vector<8x128xf32>
    %170 = vector.extract_strided_slice %164 {offsets = [8, 0], sizes = [8, 128], strides = [1, 1]} : vector<16x128xf32> to vector<8x128xf32>
    %171 = arith.mulf %169, %170 : vector<8x128xf32>
    %172 = vector.extract_strided_slice %6 {offsets = [4, 0, 0], sizes = [1, 16, 8], strides = [1, 1, 1]} : vector<6x16x8xbf16> to vector<1x16x8xbf16>
    %173 = vector.shape_cast %172 : vector<1x16x8xbf16> to vector<16x8xbf16>
    %174 = arith.truncf %171 : vector<8x128xf32> to vector<8x128xbf16>
    %cst_47 = arith.constant dense<0.000000e+00> : vector<16x128xf32>
    %175 = tpu.matmul %173, %174, %cst_47 {dimension_numbers = #tpu.dot_dimension_numbers<[1], [0], [0], [1], [0, 0, 1, 1], [], []>} : vector<16x8xbf16>, vector<8x128xbf16>, vector<16x128xf32> -> vector<16x128xf32>
    %176 = vector.extract_strided_slice %7 {offsets = [4, 0, 0], sizes = [1, 16, 1], strides = [1, 1, 1]} : vector<6x16x1xf32> to vector<1x16x1xf32>
    %177 = vector.shape_cast %176 : vector<1x16x1xf32> to vector<16x1xf32>
    %178 = vector.broadcast %177 : vector<16x1xf32> to vector<16x128xf32>
    %179 = arith.addf %175, %178 : vector<16x128xf32>
    %180 = vector.extract_strided_slice %179 {offsets = [0, 0], sizes = [8, 128], strides = [1, 1]} : vector<16x128xf32> to vector<8x128xf32>
    %c126_i32_48 = arith.constant 126 : i32
    %181 = tpu.dynamic_rotate %147 by %c126_i32_48 dim 1 : vector<8x128xf32>, i32 -> vector<8x128xf32>
    %182 = arith.addf %180, %181 : vector<8x128xf32>
    %183 = vector.extract_strided_slice %179 {offsets = [8, 0], sizes = [8, 128], strides = [1, 1]} : vector<16x128xf32> to vector<8x128xf32>
    %184 = arith.addf %183, %150 : vector<8x128xf32>
    %c124_i32_49 = arith.constant 124 : i32
    %185 = tpu.dynamic_rotate %184 by %c124_i32_49 dim 1 : vector<8x128xf32>, i32 -> vector<8x128xf32>
    %186 = tpu.concatenate %184, %185 in 0 : vector<8x128xf32>, vector<8x128xf32> -> vector<16x128xf32>
    %187 = vector.extract_strided_slice %4 {offsets = [5, 0, 0], sizes = [1, 16, 16], strides = [1, 1, 1]} : vector<6x16x16xbf16> to vector<1x16x16xbf16>
    %188 = vector.shape_cast %187 : vector<1x16x16xbf16> to vector<16x16xbf16>
    %189 = arith.truncf %186 : vector<16x128xf32> to vector<16x128xbf16>
    %cst_50 = arith.constant dense<0.000000e+00> : vector<16x128xf32>
    %190 = tpu.matmul %188, %189, %cst_50 {dimension_numbers = #tpu.dot_dimension_numbers<[1], [0], [0], [1], [0, 0, 1, 1], [], []>} : vector<16x16xbf16>, vector<16x128xbf16>, vector<16x128xf32> -> vector<16x128xf32>
    %191 = vector.extract_strided_slice %5 {offsets = [5, 0, 0], sizes = [1, 16, 1], strides = [1, 1, 1]} : vector<6x16x1xf32> to vector<1x16x1xf32>
    %192 = vector.shape_cast %191 : vector<1x16x1xf32> to vector<16x1xf32>
    %193 = vector.broadcast %192 : vector<16x1xf32> to vector<16x128xf32>
    %194 = arith.addf %190, %193 : vector<16x128xf32>
    %195 = arith.negf %194 : vector<16x128xf32>
    %196 = math.exp %195 : vector<16x128xf32>
    %cst_51 = arith.constant 1.000000e+00 : f32
    %197 = vector.broadcast %cst_51 : f32 to vector<16x128xf32>
    %198 = arith.addf %197, %196 : vector<16x128xf32>
    %199 = arith.divf %197, %198 : vector<16x128xf32>
    %200 = vector.extract_strided_slice %199 {offsets = [0, 0], sizes = [8, 128], strides = [1, 1]} : vector<16x128xf32> to vector<8x128xf32>
    %cst_52 = arith.constant 2.000000e+00 : f32
    %201 = vector.broadcast %cst_52 : f32 to vector<8x128xf32>
    %202 = arith.mulf %201, %200 : vector<8x128xf32>
    %cst_53 = arith.constant 1.000000e+00 : f32
    %203 = vector.broadcast %cst_53 : f32 to vector<8x128xf32>
    %204 = arith.subf %202, %203 : vector<8x128xf32>
    %205 = vector.extract_strided_slice %199 {offsets = [8, 0], sizes = [8, 128], strides = [1, 1]} : vector<16x128xf32> to vector<8x128xf32>
    %206 = arith.mulf %204, %205 : vector<8x128xf32>
    %207 = vector.extract_strided_slice %6 {offsets = [5, 0, 0], sizes = [1, 16, 8], strides = [1, 1, 1]} : vector<6x16x8xbf16> to vector<1x16x8xbf16>
    %208 = vector.shape_cast %207 : vector<1x16x8xbf16> to vector<16x8xbf16>
    %209 = arith.truncf %206 : vector<8x128xf32> to vector<8x128xbf16>
    %cst_54 = arith.constant dense<0.000000e+00> : vector<16x128xf32>
    %210 = tpu.matmul %208, %209, %cst_54 {dimension_numbers = #tpu.dot_dimension_numbers<[1], [0], [0], [1], [0, 0, 1, 1], [], []>} : vector<16x8xbf16>, vector<8x128xbf16>, vector<16x128xf32> -> vector<16x128xf32>
    %211 = vector.extract_strided_slice %7 {offsets = [5, 0, 0], sizes = [1, 16, 1], strides = [1, 1, 1]} : vector<6x16x1xf32> to vector<1x16x1xf32>
    %212 = vector.shape_cast %211 : vector<1x16x1xf32> to vector<16x1xf32>
    %213 = vector.broadcast %212 : vector<16x1xf32> to vector<16x128xf32>
    %214 = arith.addf %210, %213 : vector<16x128xf32>
    %215 = vector.extract_strided_slice %214 {offsets = [0, 0], sizes = [8, 128], strides = [1, 1]} : vector<16x128xf32> to vector<8x128xf32>
    %c124_i32_55 = arith.constant 124 : i32
    %216 = tpu.dynamic_rotate %182 by %c124_i32_55 dim 1 : vector<8x128xf32>, i32 -> vector<8x128xf32>
    %217 = arith.addf %215, %216 : vector<8x128xf32>
    %cst_56 = arith.constant 0.000000e+00 : f32
    %218 = vector.broadcast %cst_56 : f32 to vector<8x128xf32>
    %219 = arith.maximumf %217, %218 : vector<8x128xf32>
    %c0_57 = arith.constant 0 : index
    %c0_58 = arith.constant 0 : index
    %220 = vector.load %arg8[%c0_57, %c0_58] : memref<16x8xbf16, #tpu.memory_space<vmem>>, vector<16x8xbf16>
    %221 = arith.truncf %219 : vector<8x128xf32> to vector<8x128xbf16>
    %cst_59 = arith.constant dense<0.000000e+00> : vector<16x128xf32>
    %222 = tpu.matmul %220, %221, %cst_59 {dimension_numbers = #tpu.dot_dimension_numbers<[1], [0], [0], [1], [0, 0, 1, 1], [], []>} : vector<16x8xbf16>, vector<8x128xbf16>, vector<16x128xf32> -> vector<16x128xf32>
    %c0_60 = arith.constant 0 : index
    %c0_61 = arith.constant 0 : index
    %223 = vector.load %arg9[%c0_60, %c0_61] : memref<16x1xf32, #tpu.memory_space<vmem>>, vector<16x1xf32>
    %224 = vector.broadcast %223 : vector<16x1xf32> to vector<16x128xf32>
    %225 = arith.addf %222, %224 : vector<16x128xf32>
    %cst_62 = arith.constant 0.000000e+00 : f32
    %226 = vector.broadcast %cst_62 : f32 to vector<16x128xf32>
    %227 = arith.maximumf %225, %226 : vector<16x128xf32>
    %c0_63 = arith.constant 0 : index
    %c0_64 = arith.constant 0 : index
    %228 = vector.load %arg10[%c0_63, %c0_64] : memref<256x16xbf16, #tpu.memory_space<vmem>>, vector<256x16xbf16>
    %229 = arith.truncf %227 : vector<16x128xf32> to vector<16x128xbf16>
    %cst_65 = arith.constant dense<0.000000e+00> : vector<256x128xf32>
    %230 = tpu.matmul %228, %229, %cst_65 {dimension_numbers = #tpu.dot_dimension_numbers<[1], [0], [0], [1], [0, 0, 1, 1], [], []>} : vector<256x16xbf16>, vector<16x128xbf16>, vector<256x128xf32> -> vector<256x128xf32>
    %c0_66 = arith.constant 0 : index
    %c0_67 = arith.constant 0 : index
    %231 = vector.load %arg11[%c0_66, %c0_67] : memref<256x1xf32, #tpu.memory_space<vmem>>, vector<256x1xf32>
    %232 = vector.broadcast %231 : vector<256x1xf32> to vector<256x128xf32>
    %233 = arith.addf %230, %232 : vector<256x128xf32>
    %cst_68 = arith.constant dense<0xFF800000> : vector<128xf32>
    %234 = vector.multi_reduction <maximumf>, %233, %cst_68 [0] : vector<256x128xf32> to vector<128xf32>
    %235 = vector.shape_cast %234 : vector<128xf32> to vector<1x128xf32>
    %236 = vector.broadcast %235 : vector<1x128xf32> to vector<256x128xf32>
    %237 = arith.subf %233, %236 : vector<256x128xf32>
    %238 = math.exp %237 : vector<256x128xf32>
    %cst_69 = arith.constant dense<0.000000e+00> : vector<128xf32>
    %239 = vector.multi_reduction <add>, %238, %cst_69 [0] : vector<256x128xf32> to vector<128xf32>
    %240 = vector.shape_cast %239 : vector<128xf32> to vector<1x128xf32>
    %241 = tpu.reciprocal %240 : vector<1x128xf32> -> vector<1x128xf32>
    %242 = vector.broadcast %241 : vector<1x128xf32> to vector<256x128xf32>
    %243 = arith.mulf %238, %242 : vector<256x128xf32>
    %c0_70 = arith.constant 0 : index
    %c0_71 = arith.constant 0 : index
    %c0_72 = arith.constant 0 : index
    %244 = vector.load %arg12[%c0_70, %c0_71, %c0_72] : memref<1x256x128xf32, #tpu.memory_space<vmem>>, vector<1x256x128xf32>
    %245 = vector.shape_cast %244 : vector<1x256x128xf32> to vector<256x128xf32>
    %246 = vector.shape_cast %243 : vector<256x128xf32> to vector<1x256x128xf32>
    tpu.vector_store %arg12[%c0_70, %c0_71, %c0_72], %246 {strides = array<i32>} : memref<1x256x128xf32, #tpu.memory_space<vmem>>, vector<1x256x128xf32>,
    return
  }
  func.func @transform_0(%arg0: i32) -> (i32, i32, i32) {
    %c0_i32 = arith.constant 0 : i32
    %c0_i32_0 = arith.constant 0 : i32
    %c0_i32_1 = arith.constant 0 : i32
    return %arg0, %c0_i32, %c0_i32_0 : i32, i32, i32
  }
  func.func @transform_1(%arg0: i32) -> (i32, i32) {
    %c0_i32 = arith.constant 0 : i32
    %c0_i32_0 = arith.constant 0 : i32
    %c0_i32_1 = arith.constant 0 : i32
    return %c0_i32, %c0_i32_0 : i32, i32
  }
  func.func @transform_2(%arg0: i32) -> (i32, i32) {
    %c0_i32 = arith.constant 0 : i32
    %c0_i32_0 = arith.constant 0 : i32
    %c0_i32_1 = arith.constant 0 : i32
    return %c0_i32, %c0_i32_0 : i32, i32
  }
  func.func @transform_3(%arg0: i32) -> (i32, i32, i32) {
    %c0_i32 = arith.constant 0 : i32
    %c0_i32_0 = arith.constant 0 : i32
    %c0_i32_1 = arith.constant 0 : i32
    %c0_i32_2 = arith.constant 0 : i32
    return %c0_i32, %c0_i32_0, %c0_i32_1 : i32, i32, i32
  }
  func.func @transform_4(%arg0: i32) -> (i32, i32, i32) {
    %c0_i32 = arith.constant 0 : i32
    %c0_i32_0 = arith.constant 0 : i32
    %c0_i32_1 = arith.constant 0 : i32
    %c0_i32_2 = arith.constant 0 : i32
    return %c0_i32, %c0_i32_0, %c0_i32_1 : i32, i32, i32
  }
  func.func @transform_5(%arg0: i32) -> (i32, i32, i32) {
    %c0_i32 = arith.constant 0 : i32
    %c0_i32_0 = arith.constant 0 : i32
    %c0_i32_1 = arith.constant 0 : i32
    %c0_i32_2 = arith.constant 0 : i32
    return %c0_i32, %c0_i32_0, %c0_i32_1 : i32, i32, i32
  }
  func.func @transform_6(%arg0: i32) -> (i32, i32, i32) {
    %c0_i32 = arith.constant 0 : i32
    %c0_i32_0 = arith.constant 0 : i32
    %c0_i32_1 = arith.constant 0 : i32
    %c0_i32_2 = arith.constant 0 : i32
    return %c0_i32, %c0_i32_0, %c0_i32_1 : i32, i32, i32
  }
  func.func @transform_7(%arg0: i32) -> (i32, i32) {
    %c0_i32 = arith.constant 0 : i32
    %c0_i32_0 = arith.constant 0 : i32
    %c0_i32_1 = arith.constant 0 : i32
    return %c0_i32, %c0_i32_0 : i32, i32
  }
  func.func @transform_8(%arg0: i32) -> (i32, i32) {
    %c0_i32 = arith.constant 0 : i32
    %c0_i32_0 = arith.constant 0 : i32
    %c0_i32_1 = arith.constant 0 : i32
    return %c0_i32, %c0_i32_0 : i32, i32
  }
  func.func @transform_9(%arg0: i32) -> (i32, i32) {
    %c0_i32 = arith.constant 0 : i32
    %c0_i32_0 = arith.constant 0 : i32
    %c0_i32_1 = arith.constant 0 : i32
    return %c0_i32, %c0_i32_0 : i32, i32
  }
  func.func @transform_10(%arg0: i32) -> (i32, i32) {
    %c0_i32 = arith.constant 0 : i32
    %c0_i32_0 = arith.constant 0 : i32
    %c0_i32_1 = arith.constant 0 : i32
    return %c0_i32, %c0_i32_0 : i32, i32
  }
  func.func @transform_11(%arg0: i32) -> (i32, i32, i32) {
    %c0_i32 = arith.constant 0 : i32
    %c0_i32_0 = arith.constant 0 : i32
    %c0_i32_1 = arith.constant 0 : i32
    return %arg0, %c0_i32, %c0_i32_0 : i32, i32, i32
  }
}

</mosaic_0001>

<bundles_post_ra>
// kernel: tpu_custom_call.1
= control target key start
LH: loop header
LB: loop body
LE: loop exit
PB: predicated region body
PF: predicated region fallthrough
CT: control target
= control target key end

     0   :  { %s3723_s0 = inlined_call_operand.vmem [shape: f32[2,16,128], index: 0, kind: input, shape index: {}]   ;;  %s3724_s1 = inlined_call_operand.vmem [shape: bf16[8,16], index: 1, kind: input, shape index: {}]   ;;  %s3725_s2 = inlined_call_operand.vmem [shape: f32[8,1], index: 2, kind: input, shape index: {}]   ;;  %s3726_s3 = inlined_call_operand.vmem [shape: bf16[6,16,16], index: 3, kind: input, shape index: {}]   ;;  %s3727_s4 = inlined_call_operand.vmem [shape: f32[6,16,1], index: 4, kind: input, shape index: {}]   ;;  %s3728_s5 = inlined_call_operand.vmem [shape: bf16[6,16,8], index: 5, kind: input, shape index: {}]   ;;  %s3729_s6 = inlined_call_operand.vmem [shape: f32[6,16,1], index: 6, kind: input, shape index: {}]   ;;  %s3730_s7 = inlined_call_operand.vmem [shape: bf16[16,8], index: 7, kind: input, shape index: {}]   ;;  %s3731_s8 = inlined_call_operand.vmem [shape: f32[16,1], index: 8, kind: input, shape index: {}]   ;;  %s3732_s9 = inlined_call_operand.vmem [shape: bf16[256,16], index: 9, kind: input, shape index: {}]   ;;  %s3733_s10 = inlined_call_operand.vmem [shape: f32[256,1], index: 10, kind: input, shape index: {}]   ;;  %s3734_s11 = inlined_call_operand.hbm [shape: f32[2,256,128], index: 11, kind: output, shape index: {}]  }
   0x1   :  { %3740 = sst [smem:[#allocation5_spill]] %s3723_s0 }
   0x2   :  { %16 = vsyncpa [#allocation3], 0 }
   0x3   :  { %18 = vsyncpa [#allocation3 + $0x1], 0  ;;  %s2824_s17 = smov 0   ;;  %s2826_s18 = smov 0  }
   0x4   :  { %s2828_s19 = smov 0   ;;  %s2830_s20 = smov 0  }
   0x5 LB: > { %s2845_s21 = sadd.s32 4294967295, %s2753_s20   ;;  %s2243_s22 = sadd.s32 4294967294, %s2753_s20   ;;  %s2753_s20 = sphi %s2830_s20, %s3750_s20   ;;  %s2749_s19 = sphi %s2828_s19, %s3749_s19   ;;  %s2745_s18 = sphi %s2826_s18, %s3748_s18   ;;  %s2741_s17 = sphi %s2824_s17, %s3747_s17  }
   0x6   : > { %s2849_s23 = sadd.s32 1, %s2753_s20   ;;  %s267_s24 = sadd.s32 1, %s2749_s19 }
   0x7   : > { %s264_s25 = ssub.s32 %s2753_s20, %s2849_s23  ;;  %p277_p0 = scmp.ne.s32.totalorder %s2749_s19, %s2745_s18 }
   0x8   : > { %p265_p1 = scmp.eq.s32.totalorder %s264_s25, 0  ;;  %p278_p2 = scmp.eq.s32.totalorder %s2845_s21, 1 }
   0x9   : > { %p283_p3 = scmp.ne.s32.totalorder %s2745_s18, %s2741_s17  ;;  %p284_p4 = scmp.eq.s32.totalorder %s2243_s22, 1 }
   0xa   : > { %s2860_s26 = scalar_select %p265_p1, %s2749_s19, %s267_s24  }
   0xb   : > { %p2862_p5 = por %p278_p2, %p277_p0  ;;  %p2866_p6 = por %p284_p4, %p283_p3 }
   0xc   : > { %p2246_p7 = scmp.ge.s32.totalorder %s2753_s20, 1  ;;  %p340_p8 = scmp.lt.s32.totalorder %s2753_s20, 3 }
   0xe   : > { %p341_p9 = pnand %p2246_p7, %p340_p8 }
   0xf   : > { %p380_p10 = scmp.lt.s32.totalorder (!%p341_p9), %s2845_s21, 1  ;;  %v2755_v0 = vmov (!%p341_p9), 0.0   ;;  %vm2756_vm0 = vmmov (!%p341_p9), 0   ;;  %v389_v1 = vld [vmem:[%s3725_s2] sm:$0xff] (!%p341_p9)  ;;  %v2757_v2 = vmov (!%p341_p9), 0   ;;  %s3743_s0 = sld [smem:[#allocation5_spill]] (!%p341_p9) }
  0x10   : > { %344 = sbr.rel (%p341_p9) target bundleno = 4444 (0x115c), region = 64  ;;  %2379 = vmatprep.subr.bf16.mxu0 (!%p341_p9), %v2755_v0  ;;  %2381 = vmatprep.mubr.msk.bf16.mxu0 (!%p341_p9), %vm2756_vm0, %v2755_v0  ;;  %vm444_vm1 = vcmask (!%p341_p9), 130048   ;;  %v388_v6 = vld [vmem:[%s3724_s1] sm:$0xf] (!%p341_p9)  ;;  %s3735_s25 = smov (!%p341_p9), 127   ;;  %v427_v13 = vld [vmem:[%s3729_s6 + $0x8] sm:$0xff] (!%p341_p9) }
  0x11   : > { %2546 = vset.pattern.permute.xlu0 (!%p341_p9), %v2757_v2  ;;  %2385 = vmatprep.subr.bf16.mxu1 (!%p341_p9), %v2755_v0  ;;  %v404_v14 = vld [vmem:[%s3727_s4 + $0x10] sm:$0xff] (!%p341_p9)  ;;  %v429_v15 = vld [vmem:[%s3729_s6 + $0x18] sm:$0xff] (!%p341_p9)  ;;  %v406_v16 = vld [vmem:[%s3727_s4 + $0x20] sm:$0xff] (!%p341_p9)  ;;  %vm585_vm2 = vcmask (!%p341_p9), 1043456   ;;  %vm581_vm3 = vcmask (!%p341_p9), 64512   ;;  %s3737_s29 = smov (!%p341_p9), 126  }
  0x12   : > { %441 = vperm.xlu0 (!%p341_p9), %2546, %v389_v1   ;;  %2387 = vmatprep.mubr.msk.bf16.mxu1 (!%p341_p9), %vm2756_vm0, %v2755_v0  ;;  %v431_v17 = vld [vmem:[%s3729_s6 + $0x28] sm:$0xff] (!%p341_p9)  ;;  %v408_v18 = vld [vmem:[%s3727_s4 + $0x30] sm:$0xff] (!%p341_p9)  ;;  %v433_v19 = vld [vmem:[%s3729_s6 + $0x38] sm:$0xff] (!%p341_p9)  ;;  %s3738_s22 = smov (!%p341_p9), 124   ;;  %s3744_s15 = smov (!%p341_p9), 127  }
  0x13   : > { %2547 = vset.pattern.permute.xlu1 (!%p341_p9), %v2757_v2  ;;  %v410_v20 = vld [vmem:[%s3727_s4 + $0x40] sm:$0xff] (!%p341_p9)  ;;  %v435_v21 = vld [vmem:[%s3729_s6 + $0x48] sm:$0xff] (!%p341_p9)  ;;  %v413_v23 = vld [vmem:[%s3727_s4 + $0x58] sm:$0xff] (!%p341_p9)  ;;  %s2761_s14 = smov (!%p341_p9), [#allocation2]  }
  0x14   : > { %v426_v22 = vld [vmem:[%s3729_s6] sm:$0xff] (!%p341_p9)  ;;  %v403_v25 = vld [vmem:[%s3727_s4 + $0x8] sm:$0xff] (!%p341_p9) }
  0x15   : > { %v402_v24 = vld [vmem:[%s3727_s4] sm:$0xff] (!%p341_p9) }
  0x16   : > { %493 = vperm.xlu1 (!%p341_p9), %2547, %v402_v24   ;;  %v2548_v28 = vld [vmem:[%s3726_s3] sm:$0xff] (!%p341_p9)  }
  0x17   : > { %s381_s12 = scalar_select %p380_p10, %s2845_s21, 1  ;;  %v2549_v50 = vld [vmem:[%s3728_s5] sm:$0xff]  }
  0x19   : > { %s2332_s13 = sshll.u32 %s381_s12, 4 }
  0x1a   : > { %s384_s16 = scalar_lea.vmem %s3743_s0, %s2332_s13  ;;  %498 = vperm.xlu1 %2547, %v403_v25   ;;  %s3745_s0 = smov 124  }
  0x1b   : > { %v386_v3 = vld [vmem:[%s384_s16] sm:$0xff]  ;;  %v387_v4 = vld [vmem:[%s384_s16 + $0x8] sm:$0xff]  ;;  %s3746_s13 = smov 126   ;;  %s2695_s16 = sshll.u32 %s2761_s14, 4  ;;  %s2696_s16 = int_to_ptr.vmem [resolvable:$false] %s2695_s16 }
  0x1c   : > { %v438_v5 = vpack.c.bf16 %v387_v4, %v386_v3 }
  0x1e   : > { %2380 = vmatpush3.bf16.msra.mxu0 %v438_v5  ;;  %v405_v5 = vld [vmem:[%s3727_s4 + $0x18] sm:$0xff] }
  0x1f   : > { %2391 = vmatprep.subr.bf16.mxu0 %v2755_v0 }
  0x21   : > { %2382 = vmatmul.mubr.msk.bf16.vlgmr.msra.gmra.mrb[0].mxu0 %vm444_vm1, %v388_v6 }
  0x22   : > { %2393 = vmatprep.mubr.msk.bf16.mxu0 %vm2756_vm0, %v2755_v0 }
  0x91   : > { %v442_v7 = vpop.permute.xlu0 %441 }
  0x95   : > { %v494_v29 = vpop.permute.xlu1 %493 }
  0x99   : > { %v499_v33 = vpop.permute.xlu1 %498 }
  0xf4   : > { %v482_v8 = vpop.f32.mrb[0].mxu0 }
  0xf5   : > { %v483_v9 = vadd.f32 %v482_v8, %v442_v7  ;;  %v2383_v10 = vpop.f32.mrb[1].mxu0  ;;  %v2550_v8 = vld [vmem:[%s3726_s3 + $0x8] sm:$0xff]  }
  0xf6   : > { %v485_v11 = vpop.f32.mrb[2].mxu0 }
  0xf7   : > { %488 = vrot.lane.b32.xlu0 %v483_v9, %s3735_s25  ;;  %v2384_v12 = vpop.f32.mrb[3].mxu0  ;;  %s377_s25 = sand.u32 1, %s2745_s18  }
  0xf8   : > { %s2247_s24 = sshll.u32 %s377_s25, 8 }
  0xf9   : > { %s3613_s30 = scalar_lea.vmem [#allocation2], %s2247_s24  ;;  %s2697_s24 = scalar_lea.vmem %s2696_s16, 8192 }
  0xfa   : > { %s2181_s12 = sshll.u32 %s3613_s30, 4  ;;  %s3662_s12 = int_to_ptr.vmem [resolvable:$true] %s2181_s12 }
  0xfb   : > { %573 = vperm.xlu0 %2546, %v427_v13   ;;  %p2698_p0 = scmp.lt.s32.totalorder %s3662_s12, %s2696_s16 }
  0xff   : > { %636 = vperm.xlu0 %2546, %v404_v14  }
 0x103   : > { %716 = vperm.xlu0 %2546, %v429_v15  }
 0x107   : > { %780 = vperm.xlu0 %2546, %v406_v16  }
 0x10b   : > { %860 = vperm.xlu0 %2546, %v431_v17  }
 0x10f   : > { %924 = vperm.xlu0 %2546, %v408_v18  }
 0x113   : > { %1004 = vperm.xlu0 %2546, %v433_v19  }
 0x117   : > { %1068 = vperm.xlu0 %2546, %v410_v20  }
 0x11b   : > { %1148 = vperm.xlu0 %2546, %v435_v21  }
 0x11f   : > { %568 = vperm.xlu0 %2546, %v426_v22  }
 0x123   : > { %1217 = vperm.xlu0 %2546, %v413_v23  }
 0x169   : > { %v489_v26 = vpop.permute.xlu0 %488 }
 0x16a   : > { %v490_v27 = vpack.c.bf16 %v489_v26, %v483_v9 }
 0x16c   : > { %2386 = vmatpush3.bf16.msra.mxu1 %v490_v27 }
 0x16d   : > { %2397 = vmatprep.subr.bf16.mxu1 %v2755_v0 }
 0x16f   : > { %2388 = vmatmul.mubr.msk.bf16.vlgmr.msra.gmra.mrb[0].mxu1 %vm444_vm1, %v2548_v28 }
 0x170   : > { %2399 = vmatprep.mubr.msk.bf16.mxu1 %vm2756_vm0, %v2755_v0 }
 0x17a   : > { %v574_v51 = vpop.permute.xlu0 %573 }
 0x17e   : > { %v637_v52 = vpop.permute.xlu0 %636 }
 0x182   : > { %v717_v53 = vpop.permute.xlu0 %716 }
 0x186   : > { %v2948_v54 = vpop.permute.xlu0 %780 }
 0x18a   : > { %v2950_v55 = vpop.permute.xlu0 %860 }
 0x18e   : > { %v2952_v56 = vpop.permute.xlu0 %924 }
 0x192   : > { %v2954_v57 = vpop.permute.xlu0 %1004 }
 0x196   : > { %v2956_v58 = vpop.permute.xlu0 %1068 }
 0x19a   : > { %v2958_v59 = vpop.permute.xlu0 %1148 }
 0x19e   : > { %v569_v60 = vpop.permute.xlu0 %568 }
 0x242   : > { %v543_v30 = vpop.f32.mrb[0].mxu1 }
 0x243   : > { %v544_v31 = vadd.f32 %v543_v30, %v494_v29  ;;  %v2389_v32 = vpop.f32.mrb[1].mxu1  ;;  %v2551_v29 = vld [vmem:[%s3728_s5 + $0x8] sm:$0xff]  }
 0x244   : > { %v546_v34 = vpop.f32.mrb[2].mxu1 }
 0x245   : > { %v2253_v35 = vmul.f32 -1.442695, %v544_v31  ;;  %v547_v36 = vadd.f32 %v546_v34, %v499_v33  ;;  %v2390_v37 = vpop.f32.mrb[3].mxu1 }
 0x247   : > { %2577 = vpow2.f32 %v2253_v35  ;;  %v2254_v38 = vmul.f32 -1.442695, %v547_v36  ;;  %v407_v36 = vld [vmem:[%s3727_s4 + $0x28] sm:$0xff] }
 0x249   : > { %2579 = vpow2.f32 %v2254_v38 }
 0x251   : > { %v2578_v39 = vpop.eup %2577 }
 0x252   : > { %v556_v40 = vadd.f32 1.0, %v2578_v39  ;;  %v2552_v39 = vld [vmem:[%s3726_s3 + $0x10] sm:$0xff]  }
 0x253   : > { %v2580_v41 = vpop.eup %2579 }
 0x254   : > { %2581 = vrcp.f32 %v556_v40  ;;  %v557_v42 = vadd.f32 1.0, %v2580_v41 }
 0x256   : > { %2583 = vrcp.f32 %v557_v42 }
 0x25e   : > { %v2582_v43 = vpop.eup %2581 }
 0x25f   : > { %v562_v44 = vmul.f32 2.0, %v2582_v43 }
 0x260   : > { %v2584_v46 = vpop.eup %2583 }
 0x261   : > { %v2255_v45 = vadd.f32 -1.0, %v562_v44 }
 0x263   : > { %v564_v47 = vmul.f32 %v2584_v46, %v2255_v45 }
 0x265   : > { %v565_v48 = vpack.c.bf16 %v564_v47, %v564_v47 }
 0x267   : > { %v587_v49 = vsel %vm585_vm2, %v565_v48, 0 }
 0x268   : > { %2392 = vmatpush3.bf16.msra.mxu0 %v587_v49 }
 0x269   : > { %2403 = vmatprep.subr.bf16.mxu0 %v2755_v0 }
 0x26b   : > { %2394 = vmatmul.mubr.msk.bf16.vlgmr.msra.gmra.mrb[4].mxu0 %vm581_vm3, %v2549_v50 }
 0x26c   : > { %2405 = vmatprep.mubr.msk.bf16.mxu0 %vm2756_vm0, %v2755_v0 }
 0x33e   : > { %v623_v61 = vpop.f32.mrb[4].mxu0 }
 0x33f   : > { %v624_v62 = vadd.f32 %v623_v61, %v569_v60  ;;  %v2395_v63 = vpop.f32.mrb[5].mxu0 }
 0x340   : > { %v626_v1 = vpop.f32.mrb[6].mxu0 }
 0x341   : > { %v627_v2 = vadd.f32 %v626_v1, %v574_v51  ;;  %771 = vrot.lane.b32.xlu0 %v624_v62, %s3737_s29  ;;  %v2396_v3 = vpop.f32.mrb[7].mxu0 }
 0x343   : > { %v630_v4 = vadd.f32 %v627_v2, %v489_v26  ;;  %v2553_v2 = vld [vmem:[%s3728_s5 + $0x10] sm:$0xff]  }
 0x345   : > { %631 = vrot.lane.b32.xlu1 %v630_v4, %s3737_s29 }
 0x349   : > { %641 = vperm.xlu1 %2547, %v405_v5  }
 0x3b7   : > { %v632_v6 = vpop.permute.xlu1 %631 }
 0x3b8   : > { %v633_v7 = vpack.c.bf16 %v632_v6, %v630_v4 }
 0x3ba   : > { %2398 = vmatpush3.bf16.msra.mxu1 %v633_v7 }
 0x3bb   : > { %2409 = vmatprep.subr.bf16.mxu1 %v2755_v0 }
 0x3bd   : > { %2400 = vmatmul.mubr.msk.bf16.vlgmr.msra.gmra.mrb[4].mxu1 %vm444_vm1, %v2550_v8 }
 0x3be   : > { %2411 = vmatprep.mubr.msk.bf16.mxu1 %vm2756_vm0, %v2755_v0 }
 0x3c8   : > { %v642_v12 = vpop.permute.xlu1 %641 }
 0x490   : > { %v686_v9 = vpop.f32.mrb[4].mxu1 }
 0x491   : > { %v687_v10 = vadd.f32 %v686_v9, %v637_v52  ;;  %v2401_v11 = vpop.f32.mrb[5].mxu1  ;;  %v409_v9 = vld [vmem:[%s3727_s4 + $0x38] sm:$0xff] }
 0x492   : > { %v689_v13 = vpop.f32.mrb[6].mxu1 }
 0x493   : > { %v2260_v14 = vmul.f32 -1.442695, %v687_v10  ;;  %v690_v15 = vadd.f32 %v689_v13, %v642_v12  ;;  %v2402_v16 = vpop.f32.mrb[7].mxu1  ;;  %v2554_v12 = vld [vmem:[%s3726_s3 + $0x18] sm:$0xff]  }
 0x495   : > { %2585 = vpow2.f32 %v2260_v14  ;;  %v2261_v17 = vmul.f32 -1.442695, %v690_v15 }
 0x497   : > { %2587 = vpow2.f32 %v2261_v17 }
 0x49f   : > { %v2586_v18 = vpop.eup %2585 }
 0x4a0   : > { %v699_v19 = vadd.f32 1.0, %v2586_v18 }
 0x4a1   : > { %v2588_v20 = vpop.eup %2587 }
 0x4a2   : > { %2589 = vrcp.f32 %v699_v19  ;;  %v700_v21 = vadd.f32 1.0, %v2588_v20 }
 0x4a4   : > { %2591 = vrcp.f32 %v700_v21 }
 0x4ac   : > { %v2590_v22 = vpop.eup %2589 }
 0x4ad   : > { %v705_v23 = vmul.f32 2.0, %v2590_v22 }
 0x4ae   : > { %v2592_v25 = vpop.eup %2591 }
 0x4af   : > { %v2262_v24 = vadd.f32 -1.0, %v705_v23 }
 0x4b1   : > { %v707_v26 = vmul.f32 %v2592_v25, %v2262_v24 }
 0x4b3   : > { %v708_v27 = vpack.c.bf16 %v707_v26, %v707_v26 }
 0x4b5   : > { %v728_v28 = vsel %vm585_vm2, %v708_v27, 0 }
 0x4b6   : > { %2404 = vmatpush3.bf16.msra.mxu0 %v728_v28 }
 0x4b7   : > { %2415 = vmatprep.subr.bf16.mxu0 %v2755_v0 }
 0x4b9   : > { %2406 = vmatmul.mubr.msk.bf16.vlgmr.msra.gmra.mrb[8].mxu0 %vm581_vm3, %v2551_v29 }
 0x4ba   : > { %2417 = vmatprep.mubr.msk.bf16.mxu0 %vm2756_vm0, %v2755_v0 }
 0x58c   : > { %v2980_v30 = vpop.f32.mrb[8].mxu0 }
 0x58d   : > { %v2407_v31 = vpop.f32.mrb[9].mxu0 }
 0x58e   : > { %v767_v32 = vpop.f32.mrb[10].mxu0 }
 0x58f   : > { %v768_v33 = vadd.f32 %v767_v32, %v717_v53  ;;  %v2408_v34 = vpop.f32.mrb[11].mxu0  ;;  %v2555_v32 = vld [vmem:[%s3728_s5 + $0x18] sm:$0xff]  }
 0x591   : > { %v774_v35 = vadd.f32 %v768_v33, %v632_v6 }
 0x593   : > { %775 = vrot.lane.b32.xlu1 %v774_v35, %s3738_s22 }
 0x597   : > { %785 = vperm.xlu1 %2547, %v407_v36  }
 0x605   : > { %v776_v37 = vpop.permute.xlu1 %775 }
 0x606   : > { %v777_v38 = vpack.c.bf16 %v776_v37, %v774_v35 }
 0x608   : > { %2410 = vmatpush3.bf16.msra.mxu1 %v777_v38 }
 0x609   : > { %2421 = vmatprep.subr.bf16.mxu1 %v2755_v0 }
 0x60b   : > { %2412 = vmatmul.mubr.msk.bf16.vlgmr.msra.gmra.mrb[8].mxu1 %vm444_vm1, %v2552_v39  ;;  %v411_v39 = vld [vmem:[%s3727_s4 + $0x48] sm:$0xff] }
 0x60c   : > { %2423 = vmatprep.mubr.msk.bf16.mxu1 %vm2756_vm0, %v2755_v0 }
 0x616   : > { %v786_v43 = vpop.permute.xlu1 %785 }
 0x6de   : > { %v830_v40 = vpop.f32.mrb[8].mxu1 }
 0x6df   : > { %v831_v41 = vadd.f32 %v830_v40, %v2948_v54  ;;  %v2413_v42 = vpop.f32.mrb[9].mxu1 }
 0x6e0   : > { %v833_v44 = vpop.f32.mrb[10].mxu1  ;;  %v2556_v42 = vld [vmem:[%s3726_s3 + $0x20] sm:$0xff]  }
 0x6e1   : > { %v2267_v45 = vmul.f32 -1.442695, %v831_v41  ;;  %v834_v46 = vadd.f32 %v833_v44, %v786_v43  ;;  %v2414_v47 = vpop.f32.mrb[11].mxu1 }
 0x6e3   : > { %2593 = vpow2.f32 %v2267_v45  ;;  %v2268_v48 = vmul.f32 -1.442695, %v834_v46 }
 0x6e5   : > { %2595 = vpow2.f32 %v2268_v48 }
 0x6ed   : > { %v2594_v49 = vpop.eup %2593 }
 0x6ee   : > { %v843_v50 = vadd.f32 1.0, %v2594_v49 }
 0x6ef   : > { %v2596_v51 = vpop.eup %2595 }
 0x6f0   : > { %2597 = vrcp.f32 %v843_v50  ;;  %v844_v52 = vadd.f32 1.0, %v2596_v51 }
 0x6f2   : > { %2599 = vrcp.f32 %v844_v52 }
 0x6fa   : > { %v2598_v53 = vpop.eup %2597 }
 0x6fb   : > { %v849_v60 = vmul.f32 2.0, %v2598_v53 }
 0x6fc   : > { %v2600_v62 = vpop.eup %2599 }
 0x6fd   : > { %v2269_v61 = vadd.f32 -1.0, %v849_v60 }
 0x6ff   : > { %v851_v54 = vmul.f32 %v2600_v62, %v2269_v61 }
 0x701   : > { %v852_v63 = vpack.c.bf16 %v851_v54, %v851_v54 }
 0x703   : > { %v872_v1 = vsel %vm585_vm2, %v852_v63, 0 }
 0x704   : > { %2416 = vmatpush3.bf16.msra.mxu0 %v872_v1 }
 0x705   : > { %2427 = vmatprep.subr.bf16.mxu0 %v2755_v0 }
 0x707   : > { %2418 = vmatmul.mubr.msk.bf16.vlgmr.msra.gmra.mrb[12].mxu0 %vm581_vm3, %v2553_v2 }
 0x708   : > { %2429 = vmatprep.mubr.msk.bf16.mxu0 %vm2756_vm0, %v2755_v0 }
 0x7da   : > { %v3002_v3 = vpop.f32.mrb[12].mxu0 }
 0x7db   : > { %v2419_v4 = vpop.f32.mrb[13].mxu0 }
 0x7dc   : > { %v911_v5 = vpop.f32.mrb[14].mxu0  ;;  %v2557_v4 = vld [vmem:[%s3728_s5 + $0x20] sm:$0xff]  }
 0x7dd   : > { %v912_v6 = vadd.f32 %v911_v5, %v2950_v55  ;;  %v2420_v7 = vpop.f32.mrb[15].mxu0 }
 0x7df   : > { %v918_v8 = vadd.f32 %v912_v6, %v776_v37 }
 0x7e1   : > { %919 = vrot.lane.b32.xlu1 %v918_v8, %s3744_s15 }
 0x7e5   : > { %929 = vperm.xlu1 %2547, %v409_v9  }
 0x853   : > { %v920_v10 = vpop.permute.xlu1 %919 }
 0x854   : > { %v921_v11 = vpack.c.bf16 %v920_v10, %v918_v8 }
 0x856   : > { %2422 = vmatpush3.bf16.msra.mxu1 %v921_v11  ;;  %v412_v11 = vld [vmem:[%s3727_s4 + $0x50] sm:$0xff] }
 0x857   : > { %2433 = vmatprep.subr.bf16.mxu1 %v2755_v0 }
 0x859   : > { %2424 = vmatmul.mubr.msk.bf16.vlgmr.msra.gmra.mrb[12].mxu1 %vm444_vm1, %v2554_v12  ;;  %v428_v12 = vld [vmem:[%s3729_s6 + $0x10] sm:$0xff] }
 0x85a   : > { %2435 = vmatprep.mubr.msk.bf16.mxu1 %vm2756_vm0, %v2755_v0 }
 0x864   : > { %v930_v15 = vpop.permute.xlu1 %929 }
 0x92c   : > { %v974_v55 = vpop.f32.mrb[12].mxu1 }
 0x92d   : > { %v975_v13 = vadd.f32 %v974_v55, %v2952_v56  ;;  %v2425_v14 = vpop.f32.mrb[13].mxu1  ;;  %v430_v55 = vld [vmem:[%s3729_s6 + $0x20] sm:$0xff] }
 0x92e   : > { %v977_v16 = vpop.f32.mrb[14].mxu1  ;;  %v436_v14 = vld [vmem:[%s3729_s6 + $0x50] sm:$0xff] }
 0x92f   : > { %v2274_v17 = vmul.f32 -1.442695, %v975_v13  ;;  %v978_v18 = vadd.f32 %v977_v16, %v930_v15  ;;  %v2426_v19 = vpop.f32.mrb[15].mxu1  ;;  %v434_v13 = vld [vmem:[%s3729_s6 + $0x40] sm:$0xff] }
 0x930   : > { %v1352_v15 = vld [vmem:[%s3731_s8] sm:$0xff]  ;;  %v1457_v19 = vld [vmem:[%s3733_s10 + $0x30] sm:$0xff] }
 0x931   : > { %2601 = vpow2.f32 %v2274_v17  ;;  %v2275_v20 = vmul.f32 -1.442695, %v978_v18  ;;  %v1451_v16 = vld [vmem:[%s3733_s10] sm:$0xff]  ;;  %v1453_v17 = vld [vmem:[%s3733_s10 + $0x10] sm:$0xff] }
 0x932   : > { %v1455_v18 = vld [vmem:[%s3733_s10 + $0x20] sm:$0xff] }
 0x933   : > { %2603 = vpow2.f32 %v2275_v20  ;;  %v1459_v20 = vld [vmem:[%s3733_s10 + $0x40] sm:$0xff] }
 0x93b   : > { %v2602_v21 = vpop.eup %2601 }
 0x93c   : > { %v987_v22 = vadd.f32 1.0, %v2602_v21  ;;  %v1461_v21 = vld [vmem:[%s3733_s10 + $0x50] sm:$0xff] }
 0x93d   : > { %v2604_v23 = vpop.eup %2603 }
 0x93e   : > { %2605 = vrcp.f32 %v987_v22  ;;  %v988_v24 = vadd.f32 1.0, %v2604_v23  ;;  %v1463_v22 = vld [vmem:[%s3733_s10 + $0x60] sm:$0xff]  ;;  %v1465_v23 = vld [vmem:[%s3733_s10 + $0x70] sm:$0xff] }
 0x940   : > { %2607 = vrcp.f32 %v988_v24  ;;  %v1467_v24 = vld [vmem:[%s3733_s10 + $0x80] sm:$0xff] }
 0x948   : > { %v2606_v25 = vpop.eup %2605 }
 0x949   : > { %v993_v26 = vmul.f32 2.0, %v2606_v25  ;;  %v1469_v25 = vld [vmem:[%s3733_s10 + $0x90] sm:$0xff] }
 0x94a   : > { %v2608_v28 = vpop.eup %2607 }
 0x94b   : > { %v2276_v27 = vadd.f32 -1.0, %v993_v26  ;;  %v1471_v26 = vld [vmem:[%s3733_s10 + $0xa0] sm:$0xff] }
 0x94d   : > { %v995_v56 = vmul.f32 %v2608_v28, %v2276_v27  ;;  %v1473_v27 = vld [vmem:[%s3733_s10 + $0xb0] sm:$0xff]  ;;  %v1475_v28 = vld [vmem:[%s3733_s10 + $0xc0] sm:$0xff] }
 0x94f   : > { %v996_v29 = vpack.c.bf16 %v995_v56, %v995_v56  ;;  %v1477_v56 = vld [vmem:[%s3733_s10 + $0xd0] sm:$0xff] }
 0x951   : > { %v1016_v31 = vsel %vm585_vm2, %v996_v29, 0  ;;  %v1479_v29 = vld [vmem:[%s3733_s10 + $0xe0] sm:$0xff] }
 0x952   : > { %2428 = vmatpush3.bf16.msra.mxu0 %v1016_v31  ;;  %v1481_v31 = vld [vmem:[%s3733_s10 + $0xf0] sm:$0xff] }
 0x953   : > { %2439 = vmatprep.subr.bf16.mxu0 %v2755_v0 }
 0x955   : > { %2430 = vmatmul.mubr.msk.bf16.vlgmr.msra.gmra.mrb[16].mxu0 %vm581_vm3, %v2555_v32 }
 0x956   : > { %2441 = vmatprep.mubr.msk.bf16.mxu0 %vm2756_vm0, %v2755_v0 }
 0xa28   : > { %v3025_v33 = vpop.f32.mrb[16].mxu0 }
 0xa29   : > { %v2431_v34 = vpop.f32.mrb[17].mxu0 }
 0xa2a   : > { %v1055_v35 = vpop.f32.mrb[18].mxu0 }
 0xa2b   : > { %v1056_v36 = vadd.f32 %v1055_v35, %v2954_v57  ;;  %v2432_v37 = vpop.f32.mrb[19].mxu0  ;;  %v2558_v35 = vld [vmem:[%s3726_s3 + $0x28] sm:$0xff]  }
 0xa2c   : > { %v1218_v37 = vpop.permute.xlu0 %1217 }
 0xa2d   : > { %v1062_v38 = vadd.f32 %v1056_v36, %v920_v10 }
 0xa2f   : > { %1063 = vrot.lane.b32.xlu1 %v1062_v38, %s3737_s29  ;;  %s2333_s29 = sshll.u32 %s2845_s21, 12 }
 0xa33   : > { %1073 = vperm.xlu1 %2547, %v411_v39  }
 0xaa1   : > { %v1064_v40 = vpop.permute.xlu1 %1063 }
 0xaa2   : > { %v1065_v41 = vpack.c.bf16 %v1064_v40, %v1062_v38 }
 0xaa4   : > { %2434 = vmatpush3.bf16.msra.mxu1 %v1065_v41 }
 0xaa5   : > { %2445 = vmatprep.subr.bf16.mxu1 %v2755_v0 }
 0xaa7   : > { %2436 = vmatmul.mubr.msk.bf16.vlgmr.msra.gmra.mrb[16].mxu1 %vm444_vm1, %v2556_v42 }
 0xaa8   : > { %2447 = vmatprep.mubr.msk.bf16.mxu1 %vm2756_vm0, %v2755_v0 }
 0xab2   : > { %v1074_v45 = vpop.permute.xlu1 %1073 }
 0xb7a   : > { %v1118_v57 = vpop.f32.mrb[16].mxu1 }
 0xb7b   : > { %v1119_v43 = vadd.f32 %v1118_v57, %v2956_v58  ;;  %v2437_v44 = vpop.f32.mrb[17].mxu1 }
 0xb7c   : > { %v1121_v46 = vpop.f32.mrb[18].mxu1 }
 0xb7d   : > { %v2281_v47 = vmul.f32 -1.442695, %v1119_v43  ;;  %v1122_v48 = vadd.f32 %v1121_v46, %v1074_v45  ;;  %v2438_v49 = vpop.f32.mrb[19].mxu1 }
 0xb7f   : > { %2609 = vpow2.f32 %v2281_v47  ;;  %v2282_v50 = vmul.f32 -1.442695, %v1122_v48 }
 0xb81   : > { %2611 = vpow2.f32 %v2282_v50 }
 0xb89   : > { %v2610_v51 = vpop.eup %2609 }
 0xb8a   : > { %v1131_v52 = vadd.f32 1.0, %v2610_v51 }
 0xb8b   : > { %v2612_v53 = vpop.eup %2611 }
 0xb8c   : > { %2613 = vrcp.f32 %v1131_v52  ;;  %v1132_v60 = vadd.f32 1.0, %v2612_v53 }
 0xb8e   : > { %2615 = vrcp.f32 %v1132_v60 }
 0xb96   : > { %v2614_v61 = vpop.eup %2613 }
 0xb97   : > { %v1137_v62 = vmul.f32 2.0, %v2614_v61 }
 0xb98   : > { %v2616_v63 = vpop.eup %2615 }
 0xb99   : > { %v2283_v54 = vadd.f32 -1.0, %v1137_v62 }
 0xb9b   : > { %v1139_v58 = vmul.f32 %v2616_v63, %v2283_v54 }
 0xb9d   : > { %v1140_v1 = vpack.c.bf16 %v1139_v58, %v1139_v58 }
 0xb9f   : > { %v1160_v2 = vsel %vm585_vm2, %v1140_v1, 0 }
 0xba0   : > { %2440 = vmatpush3.bf16.msra.mxu0 %v1160_v2 }
 0xba1   : > { %2451 = vmatprep.subr.bf16.mxu0 %v2755_v0 }
 0xba3   : > { %2442 = vmatmul.mubr.msk.bf16.vlgmr.msra.gmra.mrb[20].mxu0 %vm581_vm3, %v2557_v4  ;;  %v2559_v4 = vld [vmem:[%s3728_s5 + $0x28] sm:$0xff]  }
 0xba4   : > { %2453 = vmatprep.mubr.msk.bf16.mxu0 %vm2756_vm0, %v2755_v0 }
 0xc76   : > { %v3048_v5 = vpop.f32.mrb[20].mxu0 }
 0xc77   : > { %v2443_v6 = vpop.f32.mrb[21].mxu0 }
 0xc78   : > { %v1199_v7 = vpop.f32.mrb[22].mxu0 }
 0xc79   : > { %v1200_v8 = vadd.f32 %v1199_v7, %v2958_v59  ;;  %v2444_v9 = vpop.f32.mrb[23].mxu0  ;;  %v432_v59 = vld [vmem:[%s3729_s6 + $0x30] sm:$0xff] }
 0xc7b   : > { %v1206_v10 = vadd.f32 %v1200_v8, %v1064_v40  ;;  %v772_v40 = vpop.permute.xlu0 %771 }
 0xc7d   : > { %1207 = vrot.lane.b32.xlu1 %v1206_v10, %s3738_s22  ;;  %s3682_s22 = scalar_lea.sflag [#allocation3], %s377_s25 }
 0xc81   : > { %1212 = vperm.xlu1 %2547, %v412_v11  }
 0xc85   : > { %711 = vperm.xlu1 %2547, %v428_v12  }
 0xc89   : > { %855 = vperm.xlu1 %2547, %v430_v55   ;;  %v1353_v55 = vld [vmem:[%s3731_s8 + $0x8] sm:$0xff] }
 0xc8d   : > { %999 = vperm.xlu1 %2547, %v432_v59   ;;  %v1454_v59 = vld [vmem:[%s3733_s10 + $0x18] sm:$0xff] }
 0xc91   : > { %1143 = vperm.xlu1 %2547, %v434_v13   ;;  %v1458_v13 = vld [vmem:[%s3733_s10 + $0x38] sm:$0xff] }
 0xc95   : > { %1287 = vperm.xlu1 %2547, %v436_v14   ;;  %v1460_v14 = vld [vmem:[%s3733_s10 + $0x48] sm:$0xff] }
 0xc99   : > { %1356 = vperm.xlu1 %2547, %v1352_v15   ;;  %v1462_v15 = vld [vmem:[%s3733_s10 + $0x58] sm:$0xff] }
 0xc9d   : > { %1485 = vperm.xlu1 %2547, %v1451_v16   ;;  %v1464_v16 = vld [vmem:[%s3733_s10 + $0x68] sm:$0xff] }
 0xca1   : > { %1495 = vperm.xlu1 %2547, %v1453_v17   ;;  %v1466_v17 = vld [vmem:[%s3733_s10 + $0x78] sm:$0xff] }
 0xca5   : > { %1505 = vperm.xlu1 %2547, %v1455_v18   ;;  %v1468_v18 = vld [vmem:[%s3733_s10 + $0x88] sm:$0xff] }
 0xca9   : > { %1515 = vperm.xlu1 %2547, %v1457_v19   ;;  %v1470_v19 = vld [vmem:[%s3733_s10 + $0x98] sm:$0xff] }
 0xcad   : > { %1525 = vperm.xlu1 %2547, %v1459_v20   ;;  %v1472_v20 = vld [vmem:[%s3733_s10 + $0xa8] sm:$0xff] }
 0xcb1   : > { %1535 = vperm.xlu1 %2547, %v1461_v21   ;;  %v1474_v21 = vld [vmem:[%s3733_s10 + $0xb8] sm:$0xff] }
 0xcb5   : > { %1545 = vperm.xlu1 %2547, %v1463_v22   ;;  %v1476_v22 = vld [vmem:[%s3733_s10 + $0xc8] sm:$0xff] }
 0xcb9   : > { %1555 = vperm.xlu1 %2547, %v1465_v23   ;;  %v1478_v23 = vld [vmem:[%s3733_s10 + $0xd8] sm:$0xff] }
 0xcbd   : > { %1565 = vperm.xlu1 %2547, %v1467_v24   ;;  %v1480_v24 = vld [vmem:[%s3733_s10 + $0xe8] sm:$0xff] }
 0xcc1   : > { %1575 = vperm.xlu1 %2547, %v1469_v25   ;;  %v1482_v25 = vld [vmem:[%s3733_s10 + $0xf8] sm:$0xff] }
 0xcc5   : > { %1585 = vperm.xlu1 %2547, %v1471_v26  }
 0xcc9   : > { %1595 = vperm.xlu1 %2547, %v1473_v27  }
 0xccd   : > { %1605 = vperm.xlu1 %2547, %v1475_v28  }
 0xcd1   : > { %1615 = vperm.xlu1 %2547, %v1477_v56  }
 0xcd5   : > { %1625 = vperm.xlu1 %2547, %v1479_v29  }
 0xcd9   : > { %1635 = vperm.xlu1 %2547, %v1481_v31  }
 0xcef   : > { %v1208_v32 = vpop.permute.xlu1 %1207 }
 0xcf0   : > { %v1209_v34 = vpack.c.bf16 %v1208_v32, %v1206_v10 }
 0xcf2   : > { %2446 = vmatpush3.bf16.msra.mxu1 %v1209_v34 }
 0xcf3   : > { %2457 = vmatprep.subr.bf16.mxu1 %v2755_v0 }
 0xcf5   : > { %2448 = vmatmul.mubr.msk.bf16.vlgmr.msra.gmra.mrb[20].mxu1 %vm444_vm1, %v2558_v35 }
 0xcf6   : > { %2459 = vmatprep.mubr.msk.bf16.mxu1 %vm2756_vm0, %v2755_v0 }
 0xd00   : > { %v1213_v36 = vpop.permute.xlu1 %1212 }
 0xd04   : > { %v712_v38 = vpop.permute.xlu1 %711 }
 0xd05   : > { %v765_v39 = vadd.f32 %v2980_v30, %v712_v38  ;;  %v2560_v38 = vld [vmem:[%s3730_s7] sm:$0xff]  }
 0xd07   : > { %v773_v41 = vadd.f32 %v772_v40, %v765_v39  ;;  %v2561_v39 = vld [vmem:[%s3732_s9] sm:$0xff]  }
 0xd08   : > { %v856_v42 = vpop.permute.xlu1 %855  ;;  %v2562_v40 = vld [vmem:[%s3732_s9 + $0x40] sm:$0xff]  }
 0xd09   : > { %915 = vrot.lane.b32.xlu0 %v773_v41, %s3745_s0  ;;  %v909_v57 = vadd.f32 %v3002_v3, %v856_v42 }
 0xd0c   : > { %v1000_v1 = vpop.permute.xlu1 %999 }
 0xd0d   : > { %v1053_v6 = vadd.f32 %v3025_v33, %v1000_v1  ;;  %v1452_v33 = vld [vmem:[%s3733_s10 + $0x8] sm:$0xff]  ;;  %v2575_v1 = vld [vmem:[%s3732_s9 + $0x38] sm:$0xff]  }
 0xd10   : > { %v1144_v9 = vpop.permute.xlu1 %1143 }
 0xd11   : > { %v1197_v10 = vadd.f32 %v3048_v5, %v1144_v9  ;;  %v1456_v5 = vld [vmem:[%s3733_s10 + $0x28] sm:$0xff] }
 0xd14   : > { %v1288_v29 = vpop.permute.xlu1 %1287 }
 0xd18   : > { %v1357_v41 = vpop.permute.xlu1 %1356 }
 0xd7b   : > { %v916_v43 = vpop.permute.xlu0 %915 }
 0xd7c   : > { %v917_v44 = vadd.f32 %v916_v43, %v909_v57 }
 0xd7e   : > { %1059 = vrot.lane.b32.xlu0 %v917_v44, %s3744_s15 }
 0xdc8   : > { %v1262_v45 = vpop.f32.mrb[20].mxu1 }
 0xdc9   : > { %v1263_v46 = vadd.f32 %v1262_v45, %v1213_v36  ;;  %v2449_v47 = vpop.f32.mrb[21].mxu1 }
 0xdca   : > { %v1265_v0 = vpop.f32.mrb[22].mxu1 }
 0xdcb   : > { %v2288_v48 = vmul.f32 -1.442695, %v1263_v46  ;;  %v1266_v49 = vadd.f32 %v1265_v0, %v1218_v37  ;;  %v2450_v50 = vpop.f32.mrb[23].mxu1 }
 0xdcc   : > { %v2563_v50 = vld [vmem:[%s3732_s9 + $0x8] sm:$0xff]  }
 0xdcd   : > { %2617 = vpow2.f32 %v2288_v48  ;;  %v2289_v30 = vmul.f32 -1.442695, %v1266_v49 }
 0xdcf   : > { %2619 = vpow2.f32 %v2289_v30  ;;  %v2564_v30 = vld [vmem:[%s3732_s9 + $0x48] sm:$0xff]  }
 0xdd7   : > { %v2618_v51 = vpop.eup %2617 }
 0xdd8   : > { %v1275_v52 = vadd.f32 1.0, %v2618_v51  ;;  %v2565_v51 = vld [vmem:[%s3732_s9 + $0x10] sm:$0xff]  }
 0xdd9   : > { %v2620_v53 = vpop.eup %2619 }
 0xdda   : > { %2621 = vrcp.f32 %v1275_v52  ;;  %v1276_v60 = vadd.f32 1.0, %v2620_v53  ;;  %v2566_v52 = vld [vmem:[%s3732_s9 + $0x50] sm:$0xff]   ;;  %v2567_v53 = vld [vmem:[%s3732_s9 + $0x18] sm:$0xff]  }
 0xddc   : > { %2623 = vrcp.f32 %v1276_v60  ;;  %v2568_v60 = vld [vmem:[%s3732_s9 + $0x58] sm:$0xff]  }
 0xde4   : > { %v2622_v3 = vpop.eup %2621 }
 0xde5   : > { %v1281_v61 = vmul.f32 2.0, %v2622_v3  ;;  %v2569_v3 = vld [vmem:[%s3732_s9 + $0x20] sm:$0xff]  }
 0xde6   : > { %v2624_v54 = vpop.eup %2623 }
 0xde7   : > { %v2290_v62 = vadd.f32 -1.0, %v1281_v61  ;;  %v2570_v61 = vld [vmem:[%s3732_s9 + $0x60] sm:$0xff]  }
 0xde9   : > { %v1283_v63 = vmul.f32 %v2624_v54, %v2290_v62  ;;  %v2571_v62 = vld [vmem:[%s3732_s9 + $0x28] sm:$0xff]  }
 0xdea   : > { %v2572_v54 = vld [vmem:[%s3732_s9 + $0x68] sm:$0xff]  }
 0xdeb   : > { %v1284_v58 = vpack.c.bf16 %v1283_v63, %v1283_v63  ;;  %v2573_v63 = vld [vmem:[%s3732_s9 + $0x30] sm:$0xff]  }
 0xded   : > { %v1303_v2 = vsel %vm585_vm2, %v1284_v58, 0  ;;  %v2574_v58 = vld [vmem:[%s3732_s9 + $0x70] sm:$0xff]  }
 0xdee   : > { %2452 = vmatpush3.bf16.msra.mxu0 %v1303_v2  ;;  %v2576_v2 = vld [vmem:[%s3732_s9 + $0x78] sm:$0xff]  }
 0xdf0   : > { %v1060_v7 = vpop.permute.xlu0 %1059 }
 0xdf1   : > { %v1061_v8 = vadd.f32 %v1060_v7, %v1053_v6  ;;  %2454 = vmatmul.mubr.msk.bf16.vlgmr.msra.gmra.mrb[24].mxu0 %vm581_vm3, %v2559_v4  ;;  %v1486_v4 = vpop.permute.xlu1 %1485 }
 0xdf2   : > { %2465 = vmatprep.mubr.msk.bf16.mxu0 %vm444_vm1, %v2561_v39 }
 0xdf3   : > { %1203 = vrot.lane.b32.xlu0 %v1061_v8, %s3746_s13  ;;  %s2691_s13 = scalar_lea.vmem %s3662_s12, 4096 }
 0xdf4   : > { %p2692_p11 = scmp.ne.s32.totalorder %s3662_s12, %s2691_s13  ;;  %p2699_p1 = scmp.lt.s32.totalorder %s2697_s24, %s2691_s13 }
 0xdf5   : > { %v1496_v6 = vpop.permute.xlu1 %1495 }
 0xdf6   : > { %p2693_p12 = pnand %p2692_p11, %p2862_p5  ;;  %p2700_p2 = por %p2699_p1, %p2698_p0 }
 0xdf8   : > { %p2694_p13 = pneg %p2693_p12 }
 0xdf9   : > { %v1506_v8 = vpop.permute.xlu1 %1505 }
 0xdfa   : > { %p2701_p3 = pnand %p2700_p2, %p2694_p13 }
 0xe65   : > { %v1204_v11 = vpop.permute.xlu0 %1203 }
 0xe66   : > { %v1205_v12 = vadd.f32 %v1204_v11, %v1197_v10  ;;  %v1516_v10 = vpop.permute.xlu1 %1515 }
 0xe68   : > { %1345 = vrot.lane.b32.xlu0 %v1205_v12, %s3745_s0  ;;  %s3660_s0 = scalar_lea.hbm %s3734_s11, %s2333_s29 }
 0xe6a   : > { %v1526_v12 = vpop.permute.xlu1 %1525 }
 0xe6c   : > { %1361 = vperm.xlu0 %2546, %v1353_v55  }
 0xe70   : > { %1490 = vperm.xlu0 %2546, %v1452_v33   ;;  %v1536_v33 = vpop.permute.xlu1 %1535 }
 0xe74   : > { %1500 = vperm.xlu0 %2546, %v1454_v59  }
 0xe78   : > { %1510 = vperm.xlu0 %2546, %v1456_v5   ;;  %v3261_v5 = vpop.permute.xlu1 %1545 }
 0xe7c   : > { %1520 = vperm.xlu0 %2546, %v1458_v13  }
 0xe80   : > { %1530 = vperm.xlu0 %2546, %v1460_v14   ;;  %v1556_v14 = vpop.permute.xlu1 %1555 }
 0xe84   : > { %1540 = vperm.xlu0 %2546, %v1462_v15  }
 0xe88   : > { %1550 = vperm.xlu0 %2546, %v1464_v16   ;;  %v3265_v16 = vpop.permute.xlu1 %1565 }
 0xe8c   : > { %1560 = vperm.xlu0 %2546, %v1466_v17  }
 0xe90   : > { %1570 = vperm.xlu0 %2546, %v1468_v18   ;;  %v3269_v18 = vpop.permute.xlu1 %1575 }
 0xe94   : > { %1580 = vperm.xlu0 %2546, %v1470_v19  }
 0xe98   : > { %1590 = vperm.xlu0 %2546, %v1472_v20   ;;  %v3273_v20 = vpop.permute.xlu1 %1585 }
 0xe9c   : > { %1600 = vperm.xlu0 %2546, %v1474_v21  }
 0xea0   : > { %1610 = vperm.xlu0 %2546, %v1476_v22   ;;  %v3277_v22 = vpop.permute.xlu1 %1595 }
 0xea4   : > { %1620 = vperm.xlu0 %2546, %v1478_v23  }
 0xea8   : > { %1630 = vperm.xlu0 %2546, %v1480_v24  }
 0xeac   : > { %1640 = vperm.xlu0 %2546, %v1482_v25  }
 0xec4   : > { %v1339_v26 = vpop.f32.mrb[24].mxu0 }
 0xec5   : > { %v2455_v27 = vpop.f32.mrb[25].mxu0  ;;  %v1340_v31 = vadd.f32 %v1339_v26, %v1288_v29 }
 0xec6   : > { %v1342_v28 = vpop.f32.mrb[26].mxu0 }
 0xec7   : > { %v2456_v56 = vpop.f32.mrb[27].mxu0 }
 0xeda   : > { %v1346_v32 = vpop.permute.xlu0 %1345 }
 0xedb   : > { %v1347_v34 = vadd.f32 %v1346_v32, %v1340_v31  ;;  %v3283_v32 = vpop.permute.xlu1 %1605 }
 0xedd   : > { %v1348_v35 = vmax.f32 %v1347_v34, 0.0 }
 0xedf   : > { %v1351_v36 = vpack.c.bf16 %v1348_v35, %v1348_v35 }
 0xee1   : > { %v1373_v37 = vsel %vm585_vm2, %v1351_v36, 0 }
 0xee2   : > { %2458 = vmatpush3.bf16.msra.mxu1 %v1373_v37 }
 0xee5   : > { %2460 = vmatmul.mubr.msk.bf16.vlgmr.msra.gmra.mrb[24].mxu1 %vm581_vm3, %v2560_v38 }
 0xee6   : > { %2481 = vmatprep.mubr.msk.bf16.mxu1 %vm444_vm1, %v2562_v40 }
 0xeeb   : > { %v1362_v44 = vpop.permute.xlu0 %1361 }
 0xeef   : > { %v1491_v7 = vpop.permute.xlu0 %1490 }
 0xef3   : > { %v1501_v9 = vpop.permute.xlu0 %1500 }
 0xef7   : > { %v1511_v11 = vpop.permute.xlu0 %1510 }
 0xefb   : > { %v1521_v55 = vpop.permute.xlu0 %1520 }
 0xeff   : > { %v1531_v59 = vpop.permute.xlu0 %1530 }
 0xf03   : > { %v1541_v13 = vpop.permute.xlu0 %1540 }
 0xf07   : > { %v3263_v15 = vpop.permute.xlu0 %1550 }
 0xf0b   : > { %v3267_v17 = vpop.permute.xlu0 %1560 }
 0xf0f   : > { %v3271_v19 = vpop.permute.xlu0 %1570 }
 0xf13   : > { %v3275_v21 = vpop.permute.xlu0 %1580 }
 0xf17   : > { %v3279_v23 = vpop.permute.xlu0 %1590 }
 0xf1b   : > { %v3285_v34 = vpop.permute.xlu0 %1600 }
 0xfb8   : > { %v1409_v42 = vpop.f32.mrb[24].mxu1 }
 0xfb9   : > { %v1410_v57 = vadd.f32 %v1409_v42, %v1357_v41  ;;  %v2461_v43 = vpop.f32.mrb[25].mxu1 }
 0xfba   : > { %v1412_v45 = vpop.f32.mrb[26].mxu1 }
 0xfbb   : > { %v1413_v46 = vadd.f32 %v1412_v45, %v1362_v44  ;;  %v2462_v47 = vpop.f32.mrb[27].mxu1  ;;  %v1416_v0 = vmax.f32 %v1410_v57, 0.0 }
 0xfbd   : > { %v1417_v48 = vmax.f32 %v1413_v46, 0.0 }
 0xfbf   : > { %v1450_v49 = vpack.c.bf16 %v1417_v48, %v1416_v0 }
 0xfc1   : > { %2463 = vmatprep.subr.bf16.mxu0 %v1450_v49  ;;  %2497 = vmatprep.subr.bf16.mxu1 %v1450_v49 }
 0xfc2   : > { %2464 = vmatpush3.bf16.msra.mxu0 %v1450_v49  ;;  %2498 = vmatpush3.bf16.msra.mxu1 %v1450_v49 }
 0xfc5   : > { %2466 = vmatmul.mubr.msk.bf16.vlgmr.msra.gmra.mrb[28].mxu0 %vm444_vm1, %v2563_v50  ;;  %2482 = vmatmul.mubr.msk.bf16.vlgmr.msra.gmra.mrb[28].mxu1 %vm444_vm1, %v2564_v30 }
 0xfc6   : > { %2469 = vmatprep.mubr.msk.bf16.mxu0 %vm444_vm1, %v2565_v51  ;;  %2485 = vmatprep.mubr.msk.bf16.mxu1 %vm444_vm1, %v2566_v52  ;;  %v1616_v52 = vpop.permute.xlu1 %1615 }
 0xfcd   : > { %2470 = vmatmul.mubr.msk.bf16.gmra.mrb[32].mxu0 %vm444_vm1, %v2567_v53  ;;  %2486 = vmatmul.mubr.msk.bf16.gmra.mrb[32].mxu1 %vm444_vm1, %v2568_v60  ;;  %v1611_v53 = vpop.permute.xlu0 %1610 }
 0xfce   : > { %2473 = vmatprep.mubr.msk.bf16.mxu0 %vm444_vm1, %v2569_v3  ;;  %2489 = vmatprep.mubr.msk.bf16.mxu1 %vm444_vm1, %v2570_v61 }
 0xfd5   : > { %2474 = vmatmul.mubr.msk.bf16.gmra.mrb[36].mxu0 %vm444_vm1, %v2571_v62  ;;  %2490 = vmatmul.mubr.msk.bf16.gmra.mrb[36].mxu1 %vm444_vm1, %v2572_v54 }
 0xfd6   : > { %2477 = vmatprep.mubr.msk.bf16.mxu0 %vm444_vm1, %v2573_v63  ;;  %2493 = vmatprep.mubr.msk.bf16.mxu1 %vm444_vm1, %v2574_v58 }
 0xfdd   : > { %2478 = vmatmul.mubr.msk.bf16.gmra.mrb[40].mxu0 %vm444_vm1, %v2575_v1  ;;  %2494 = vmatmul.mubr.msk.bf16.gmra.mrb[40].mxu1 %vm444_vm1, %v2576_v2 }
0x1098   : > { %v2467_v24 = vpop.f32.mrb[28].mxu0  ;;  %v2483_v25 = vpop.f32.mrb[28].mxu1 }
0x1099   : > { %v1805_v26 = vpop.f32.mrb[29].mxu0  ;;  %v1869_v27 = vpop.f32.mrb[29].mxu1  ;;  %v3287_v37 = vadd.f32 %v2467_v24, %v1496_v6 }
0x109a   : > { %v2468_v28 = vpop.f32.mrb[30].mxu0  ;;  %v2484_v56 = vpop.f32.mrb[30].mxu1  ;;  %v3291_v41 = vadd.f32 %v1805_v26, %v1486_v4 }
0x109b   : > { %v1808_v29 = vpop.f32.mrb[31].mxu0  ;;  %v3281_v31 = vpop.f32.mrb[31].mxu1  ;;  %v3295_v44 = vadd.f32 %v2468_v28, %v1501_v9 }
0x109c   : > { %v3301_v48 = vadd.f32 %v1808_v29, %v1491_v7 }
0x10a0   : > { %v2471_v35 = vpop.f32.mrb[32].mxu0  ;;  %v2487_v36 = vpop.f32.mrb[32].mxu1 }
0x10a1   : > { %v3289_v38 = vadd.f32 %v2471_v35, %v1516_v10  ;;  %v1821_v39 = vpop.f32.mrb[33].mxu0  ;;  %v1885_v40 = vpop.f32.mrb[33].mxu1 }
0x10a2   : > { %v3293_v42 = vadd.f32 %v1821_v39, %v1506_v8  ;;  %v2472_v57 = vpop.f32.mrb[34].mxu0  ;;  %v2488_v43 = vpop.f32.mrb[34].mxu1 }
0x10a3   : > { %v1934_v45 = vmax.f32 %v3287_v37, %v3289_v38  ;;  %v3299_v46 = vadd.f32 %v2472_v57, %v1521_v55  ;;  %v1824_v47 = vpop.f32.mrb[35].mxu0  ;;  %v1888_v0 = vpop.f32.mrb[35].mxu1 }
0x10a4   : > { %v1932_v49 = vmax.f32 %v3291_v41, %v3293_v42  ;;  %v3305_v50 = vadd.f32 %v1824_v47, %v1511_v11  ;;  %v1621_v11 = vpop.permute.xlu0 %1620 }
0x10a5   : > { %v1935_v30 = vmax.f32 %v3295_v44, %v3299_v46 }
0x10a6   : > { %v1933_v51 = vmax.f32 %v3301_v48, %v3305_v50 }
0x10a8   : > { %v2475_v60 = vpop.f32.mrb[36].mxu0  ;;  %v2491_v3 = vpop.f32.mrb[36].mxu1 }
0x10a9   : > { %v3311_v61 = vadd.f32 %v2475_v60, %v1536_v33  ;;  %v1837_v62 = vpop.f32.mrb[37].mxu0  ;;  %v1901_v54 = vpop.f32.mrb[37].mxu1  ;;  %v3343_v60 = vadd.f32 %v2484_v56, %v3275_v21  ;;  %v3360_v21 = vadd.f32 %v2488_v43, %v3285_v34 }
0x10aa   : > { %v3313_v63 = vadd.f32 %v1837_v62, %v1526_v12  ;;  %v2476_v58 = vpop.f32.mrb[38].mxu0  ;;  %v2492_v1 = vpop.f32.mrb[38].mxu1  ;;  %v3352_v62 = vadd.f32 %v3281_v31, %v3271_v19  ;;  %v3367_v19 = vadd.f32 %v1888_v0, %v3279_v23 }
0x10ab   : > { %v1938_v2 = vmax.f32 %v1934_v45, %v3311_v61  ;;  %v3316_v4 = vadd.f32 %v2476_v58, %v1541_v13  ;;  %v1840_v6 = vpop.f32.mrb[39].mxu0  ;;  %v1904_v7 = vpop.f32.mrb[39].mxu1 }
0x10ac   : > { %v1936_v8 = vmax.f32 %v1932_v49, %v3313_v63  ;;  %v3319_v9 = vadd.f32 %v1840_v6, %v1531_v59  ;;  %v1626_v33 = vpop.permute.xlu1 %1625  ;;  %v3329_v59 = vadd.f32 %v2483_v25, %v3269_v18  ;;  %v3346_v18 = vadd.f32 %v2487_v36, %v3277_v22 }
0x10ad   : > { %v1939_v10 = vmax.f32 %v1935_v30, %v3316_v4  ;;  %v1631_v30 = vpop.permute.xlu0 %1630  ;;  %v3362_v22 = vadd.f32 %v2491_v3, %v1616_v52  ;;  %v3380_v6 = vadd.f32 %v1904_v7, %v1611_v53 }
0x10ae   : > { %v1937_v55 = vmax.f32 %v1933_v51, %v3319_v9 }
0x10b0   : > { %v2479_v12 = vpop.f32.mrb[40].mxu0  ;;  %v2495_v24 = vpop.f32.mrb[40].mxu1 }
0x10b1   : > { %v3323_v26 = vadd.f32 %v2479_v12, %v1556_v14  ;;  %v1853_v28 = vpop.f32.mrb[41].mxu0  ;;  %v1917_v29 = vpop.f32.mrb[41].mxu1  ;;  %v3336_v14 = vadd.f32 %v1869_v27, %v3265_v16  ;;  %v3355_v16 = vadd.f32 %v1885_v40, %v3273_v20  ;;  %v3370_v20 = vadd.f32 %v1901_v54, %v3283_v32 }
0x10b2   : > { %v3326_v13 = vadd.f32 %v1853_v28, %v3261_v5  ;;  %v2480_v35 = vpop.f32.mrb[42].mxu0  ;;  %v2496_v39 = vpop.f32.mrb[42].mxu1  ;;  %v3382_v23 = vadd.f32 %v1917_v29, %v1626_v33 }
0x10b3   : > { %v1942_v57 = vmax.f32 %v1938_v2, %v3323_v26  ;;  %v3333_v45 = vadd.f32 %v2480_v35, %v3267_v17  ;;  %v1856_v47 = vpop.f32.mrb[43].mxu0  ;;  %v1920_v49 = vpop.f32.mrb[43].mxu1  ;;  %v3374_v2 = vadd.f32 %v2492_v1, %v1621_v11 }
0x10b4   : > { %v1940_v51 = vmax.f32 %v1936_v8, %v3326_v13  ;;  %v3340_v5 = vadd.f32 %v1856_v47, %v3263_v15  ;;  %v1636_v58 = vpop.permute.xlu1 %1635  ;;  %v1641_v3 = vpop.permute.xlu0 %1640  ;;  %v3391_v11 = vadd.f32 %v1920_v49, %v1631_v30 }
0x10b5   : > { %v1946_v17 = vmax.f32 %v1942_v57, %v3329_v59  ;;  %v1943_v25 = vmax.f32 %v1939_v10, %v3333_v45  ;;  %v3376_v34 = vadd.f32 %v2495_v24, %v1636_v58  ;;  %v3387_v8 = vadd.f32 %v2496_v39, %v1641_v3 }
0x10b6   : > { %v1944_v15 = vmax.f32 %v1940_v51, %v3336_v14  ;;  %v1941_v27 = vmax.f32 %v1937_v55, %v3340_v5 }
0x10b7   : > { %v1950_v56 = vmax.f32 %v1946_v17, %v3346_v18  ;;  %v1947_v36 = vmax.f32 %v1943_v25, %v3343_v60 }
0x10b8   : > { %v1948_v31 = vmax.f32 %v1944_v15, %v3355_v16  ;;  %v1945_v40 = vmax.f32 %v1941_v27, %v3352_v62 }
0x10b9   : > { %v1954_v43 = vmax.f32 %v1950_v56, %v3362_v22  ;;  %v1951_v52 = vmax.f32 %v1947_v36, %v3360_v21 }
0x10ba   : > { %v1952_v32 = vmax.f32 %v1948_v31, %v3370_v20  ;;  %v1949_v0 = vmax.f32 %v1945_v40, %v3367_v19 }
0x10bb   : > { %v1958_v54 = vmax.f32 %v1954_v43, %v3376_v34  ;;  %v1955_v1 = vmax.f32 %v1951_v52, %v3374_v2 }
0x10bc   : > { %v1956_v10 = vmax.f32 %v1952_v32, %v3382_v23  ;;  %v1953_v55 = vmax.f32 %v1949_v0, %v3380_v6 }
0x10bd   : > { %v1959_v53 = vmax.f32 %v1955_v1, %v3387_v8 }
0x10be   : > { %v1957_v7 = vmax.f32 %v1953_v55, %v3391_v11 }
0x10bf   : > { %v1961_v33 = vmax.f32 %v1958_v54, %v1959_v53 }
0x10c0   : > { %v1960_v12 = vmax.f32 %v1956_v10, %v1957_v7 }
0x10c2   : > { %v1962_v24 = vmax.f32 %v1960_v12, %v1961_v33 }
0x10c4   : > { %v1963_v28 = vrot.slane %v1962_v24, 4 }
0x10c6   : > { %v1964_v29 = vmax.f32 %v1962_v24, %v1963_v28 }
0x10c8   : > { %v1965_v35 = vrot.slane %v1964_v29, 2 }
0x10ca   : > { %v1966_v39 = vmax.f32 %v1964_v29, %v1965_v35 }
0x10cc   : > { %v1967_v57 = vrot.slane %v1966_v39, 1 }
0x10ce   : > { %v3396_v47 = vmax.f32 %v1966_v39, %v1967_v57 }
0x10d0   : > { %v1969_v49 = vsub.f32 %v3291_v41, %v3396_v47  ;;  %v1970_v30 = vsub.f32 %v3301_v48, %v3396_v47  ;;  %v1971_v51 = vsub.f32 %v3287_v37, %v3396_v47  ;;  %v1972_v17 = vsub.f32 %v3295_v44, %v3396_v47 }
0x10d1   : > { %v1973_v25 = vsub.f32 %v3293_v42, %v3396_v47  ;;  %v1974_v15 = vsub.f32 %v3305_v50, %v3396_v47  ;;  %v1975_v27 = vsub.f32 %v3289_v38, %v3396_v47  ;;  %v1976_v41 = vsub.f32 %v3299_v46, %v3396_v47 }
0x10d2   : > { %v1977_v48 = vsub.f32 %v3313_v63, %v3396_v47  ;;  %v1978_v37 = vsub.f32 %v3319_v9, %v3396_v47  ;;  %v1979_v44 = vsub.f32 %v3311_v61, %v3396_v47  ;;  %v1980_v42 = vsub.f32 %v3316_v4, %v3396_v47 }
0x10d3   : > { %v1981_v50 = vsub.f32 %v3326_v13, %v3396_v47  ;;  %v1982_v38 = vsub.f32 %v3340_v5, %v3396_v47  ;;  %v1983_v46 = vsub.f32 %v3323_v26, %v3396_v47  ;;  %v1984_v63 = vsub.f32 %v3333_v45, %v3396_v47 }
0x10d4   : > { %v1985_v9 = vsub.f32 %v3336_v14, %v3396_v47  ;;  %v1986_v61 = vsub.f32 %v3352_v62, %v3396_v47  ;;  %v1987_v4 = vsub.f32 %v3329_v59, %v3396_v47  ;;  %v1988_v13 = vsub.f32 %v3343_v60, %v3396_v47 }
0x10d5   : > { %v1989_v5 = vsub.f32 %v3355_v16, %v3396_v47  ;;  %v1990_v26 = vsub.f32 %v3367_v19, %v3396_v47  ;;  %v1991_v45 = vsub.f32 %v3346_v18, %v3396_v47  ;;  %v1992_v56 = vsub.f32 %v3360_v21, %v3396_v47 }
0x10d6   : > { %v1993_v36 = vsub.f32 %v3370_v20, %v3396_v47  ;;  %v1994_v58 = vsub.f32 %v3380_v6, %v3396_v47  ;;  %v1995_v31 = vsub.f32 %v3362_v22, %v3396_v47  ;;  %v1996_v40 = vsub.f32 %v3374_v2, %v3396_v47 }
0x10d7   : > { %v1997_v43 = vsub.f32 %v3382_v23, %v3396_v47  ;;  %v1998_v52 = vsub.f32 %v3391_v11, %v3396_v47  ;;  %v1999_v3 = vsub.f32 %v3376_v34, %v3396_v47  ;;  %v2000_v32 = vsub.f32 %v3387_v8, %v3396_v47 }
0x10d8   : > { %v2001_v0 = vmul.f32 1.442695, %v1969_v49  ;;  %v2003_v54 = vmul.f32 1.442695, %v1970_v30  ;;  %v2005_v1 = vmul.f32 1.442695, %v1971_v51 }
0x10d9   : > { %v2007_v10 = vmul.f32 1.442695, %v1972_v17  ;;  %v2009_v55 = vmul.f32 1.442695, %v1973_v25  ;;  %v2011_v53 = vmul.f32 1.442695, %v1974_v15 }
0x10da   : > { %2625 = vpow2.f32 %v2001_v0  ;;  %v2013_v7 = vmul.f32 1.442695, %v1975_v27  ;;  %v2015_v33 = vmul.f32 1.442695, %v1976_v41  ;;  %v2017_v28 = vmul.f32 1.442695, %v1977_v48 }
0x10db   : > { %2627 = vpow2.f32 %v2003_v54  ;;  %v2019_v39 = vmul.f32 1.442695, %v1978_v37  ;;  %v2021_v30 = vmul.f32 1.442695, %v1979_v44  ;;  %v2023_v25 = vmul.f32 1.442695, %v1980_v42 }
0x10dc   : > { %2629 = vpow2.f32 %v2005_v1  ;;  %v2025_v41 = vmul.f32 1.442695, %v1981_v50  ;;  %v2027_v0 = vmul.f32 1.442695, %v1982_v38  ;;  %v2029_v1 = vmul.f32 1.442695, %v1983_v46 }
0x10dd   : > { %2631 = vpow2.f32 %v2007_v10  ;;  %v2033_v38 = vmul.f32 1.442695, %v1985_v9  ;;  %v2035_v46 = vmul.f32 1.442695, %v1986_v61 }
0x10de   : > { %2633 = vpow2.f32 %v2009_v55  ;;  %v2031_v55 = vmul.f32 1.442695, %v1984_v63 }
0x10df   : > { %2635 = vpow2.f32 %v2011_v53 }
0x10e0   : > { %2637 = vpow2.f32 %v2013_v7 }
0x10e1   : > { %2639 = vpow2.f32 %v2015_v33 }
0x10e2   : > { %2641 = vpow2.f32 %v2017_v28 }
0x10e3   : > { %2643 = vpow2.f32 %v2019_v39  ;;  %v2039_v39 = vmul.f32 1.442695, %v1988_v13 }
0x10e4   : > { %v3462_v12 = vpop.eup %2625  ;;  %2645 = vpow2.f32 %v2021_v30  ;;  %v2043_v30 = vmul.f32 1.442695, %v1990_v26 }
0x10e5   : > { %v3464_v24 = vpop.eup %2627  ;;  %2647 = vpow2.f32 %v2023_v25  ;;  %v2047_v25 = vmul.f32 1.442695, %v1992_v56 }
0x10e6   : > { %v2065_v29 = vadd.f32 %v3464_v24, %v3462_v12  ;;  %v3468_v35 = vpop.eup %2629  ;;  %2649 = vpow2.f32 %v2025_v41  ;;  %v2051_v41 = vmul.f32 1.442695, %v1994_v58 }
0x10e7   : > { %v3471_v49 = vpop.eup %2631  ;;  %2651 = vpow2.f32 %v2027_v0  ;;  %v2055_v0 = vmul.f32 1.442695, %v1996_v40 }
0x10e8   : > { %v2066_v57 = vadd.f32 %v3468_v35, %v2065_v29  ;;  %v3474_v17 = vpop.eup %2633  ;;  %2653 = vpow2.f32 %v2029_v1  ;;  %v2037_v29 = vmul.f32 1.442695, %v1987_v4  ;;  %v2059_v1 = vmul.f32 1.442695, %v1998_v52 }
0x10e9   : > { %v3477_v27 = vpop.eup %2635  ;;  %2655 = vpow2.f32 %v2031_v55  ;;  %v2063_v55 = vmul.f32 1.442695, %v2000_v32 }
0x10ea   : > { %v2067_v51 = vadd.f32 %v3471_v49, %v2066_v57  ;;  %v3480_v37 = vpop.eup %2637  ;;  %2657 = vpow2.f32 %v2033_v38  ;;  %v2041_v57 = vmul.f32 1.442695, %v1989_v5 }
0x10eb   : > { %v3483_v54 = vpop.eup %2639  ;;  %2659 = vpow2.f32 %v2035_v46 }
0x10ec   : > { %v2068_v15 = vadd.f32 %v3474_v17, %v2067_v51  ;;  %v3486_v10 = vpop.eup %2641  ;;  %2661 = vpow2.f32 %v2037_v29  ;;  %v2045_v51 = vmul.f32 1.442695, %v1991_v45 }
0x10ed   : > { %v3489_v53 = vpop.eup %2643  ;;  %2663 = vpow2.f32 %v2039_v39 }
0x10ee   : > { %v2069_v48 = vadd.f32 %v3477_v27, %v2068_v15  ;;  %v3495_v33 = vpop.eup %2645  ;;  %2665 = vpow2.f32 %v2041_v57  ;;  %v2049_v15 = vmul.f32 1.442695, %v1993_v36 }
0x10ef   : > { %v3501_v28 = vpop.eup %2647  ;;  %2667 = vpow2.f32 %v2043_v30 }
0x10f0   : > { %v2070_v44 = vadd.f32 %v3480_v37, %v2069_v48  ;;  %v3507_v9 = vpop.eup %2649  ;;  %2669 = vpow2.f32 %v2045_v51  ;;  %v2053_v48 = vmul.f32 1.442695, %v1995_v31 }
0x10f1   : > { %v3513_v61 = vpop.eup %2651  ;;  %2671 = vpow2.f32 %v2047_v25 }
0x10f2   : > { %v2071_v42 = vadd.f32 %v3483_v54, %v2070_v44  ;;  %v3519_v4 = vpop.eup %2653  ;;  %2673 = vpow2.f32 %v2049_v15  ;;  %v2057_v44 = vmul.f32 1.442695, %v1997_v43 }
0x10f3   : > { %v3525_v13 = vpop.eup %2655  ;;  %2675 = vpow2.f32 %v2051_v41 }
0x10f4   : > { %v2072_v50 = vadd.f32 %v3486_v10, %v2071_v42  ;;  %v3531_v5 = vpop.eup %2657  ;;  %2677 = vpow2.f32 %v2053_v48  ;;  %v2061_v42 = vmul.f32 1.442695, %v1999_v3 }
0x10f5   : > { %v3537_v26 = vpop.eup %2659  ;;  %2679 = vpow2.f32 %v2055_v0 }
0x10f6   : > { %v2073_v7 = vadd.f32 %v3489_v53, %v2072_v50  ;;  %v3543_v45 = vpop.eup %2661  ;;  %2681 = vpow2.f32 %v2057_v44 }
0x10f7   : > { %v3549_v56 = vpop.eup %2663  ;;  %2683 = vpow2.f32 %v2059_v1 }
0x10f8   : > { %v2074_v63 = vadd.f32 %v3495_v33, %v2073_v7  ;;  %v3555_v36 = vpop.eup %2665  ;;  %2685 = vpow2.f32 %v2061_v42 }
0x10f9   : > { %v3561_v58 = vpop.eup %2667  ;;  %2687 = vpow2.f32 %v2063_v55 }
0x10fa   : > { %v2075_v14 = vadd.f32 %v3501_v28, %v2074_v63  ;;  %v3567_v31 = vpop.eup %2669 }
0x10fb   : > { %v3573_v40 = vpop.eup %2671 }
0x10fc   : > { %v2076_v62 = vadd.f32 %v3507_v9, %v2075_v14  ;;  %v3579_v43 = vpop.eup %2673 }
0x10fd   : > { %v3585_v52 = vpop.eup %2675 }
0x10fe   : > { %v2077_v59 = vadd.f32 %v3513_v61, %v2076_v62  ;;  %v3588_v38 = vpop.eup %2677 }
0x10ff   : > { %v3591_v3 = vpop.eup %2679 }
0x1100   : > { %v2078_v60 = vadd.f32 %v3519_v4, %v2077_v59  ;;  %v3594_v46 = vpop.eup %2681 }
0x1101   : > { %v2684_v47 = vpop.eup %2683 }
0x1102   : > { %v2079_v16 = vadd.f32 %v3525_v13, %v2078_v60  ;;  %v3597_v63 = vpop.eup %2685 }
0x1103   : > { %v3600_v14 = vpop.eup %2687 }
0x1104   : > { %v2080_v19 = vadd.f32 %v3531_v5, %v2079_v16 }
0x1106   : > { %v2081_v18 = vadd.f32 %v3537_v26, %v2080_v19 }
0x1108   : > { %v2082_v21 = vadd.f32 %v3543_v45, %v2081_v18 }
0x110a   : > { %v2083_v20 = vadd.f32 %v3549_v56, %v2082_v21 }
0x110c   : > { %v2084_v6 = vadd.f32 %v3555_v36, %v2083_v20 }
0x110e   : > { %v2085_v22 = vadd.f32 %v3561_v58, %v2084_v6 }
0x1110   : > { %v2086_v2 = vadd.f32 %v3567_v31, %v2085_v22 }
0x1112   : > { %v2087_v23 = vadd.f32 %v3573_v40, %v2086_v2 }
0x1114   : > { %v2088_v11 = vadd.f32 %v3579_v43, %v2087_v23 }
0x1116   : > { %v2089_v50 = vadd.f32 %v3585_v52, %v2088_v11 }
0x1118   : > { %v2090_v34 = vadd.f32 %v3588_v38, %v2089_v50 }
0x111a   : > { %v2091_v7 = vadd.f32 %v3591_v3, %v2090_v34 }
0x111c   : > { %v2092_v8 = vadd.f32 %v3594_v46, %v2091_v7 }
0x111e   : > { %v2093_v32 = vadd.f32 %v2684_v47, %v2092_v8 }
0x1120   : > { %v2094_v29 = vadd.f32 %v3597_v63, %v2093_v32 }
0x1122   : > { %v2095_v39 = vadd.f32 %v3600_v14, %v2094_v29 }
0x1124   : > { %v2096_v62 = vrot.slane %v2095_v39, 4 }
0x1126   : > { %v2097_v57 = vadd.f32 %v2096_v62, %v2095_v39 }
0x1128   : > { %v2098_v59 = vrot.slane %v2097_v57, 2 }
0x112a   : > { %v2099_v30 = vadd.f32 %v2098_v59, %v2097_v57 }
0x112c   : > { %v2100_v60 = vrot.slane %v2099_v30, 1 }
0x112e   : > { %v2101_v51 = vadd.f32 %v2100_v60, %v2099_v30 }
0x1130   : > { %2689 = vrcp.f32 %v2101_v51 }
0x113a   : > { %v2690_v16 = vpop.eup %2689 }
0x113b   : > { %v2132_v25 = vmul.f32 %v2690_v16, %v2684_v47  ;;  %v2103_v19 = vmul.f32 %v2690_v16, %v3462_v12  ;;  %v2104_v15 = vmul.f32 %v2690_v16, %v3464_v24  ;;  %v2105_v18 = vmul.f32 %v2690_v16, %v3468_v35 }
0x113c   : > { %v2106_v41 = vmul.f32 %v2690_v16, %v3471_v49  ;;  %v2107_v21 = vmul.f32 %v2690_v16, %v3474_v17  ;;  %v2108_v48 = vmul.f32 %v2690_v16, %v3477_v27  ;;  %v2109_v20 = vmul.f32 %v2690_v16, %v3480_v37 }
0x113d   : > { %2164 = vst [vmem:[%s3613_s30 + $0xe8] sm:$0xff] %v2132_v25  ;;  %v2110_v12 = vmul.f32 %v2690_v16, %v3483_v54  ;;  %v2111_v24 = vmul.f32 %v2690_v16, %v3486_v10  ;;  %v2112_v35 = vmul.f32 %v2690_v16, %v3489_v53  ;;  %v2113_v49 = vmul.f32 %v2690_v16, %v3495_v33 }
0x113e   : > { %2135 = vst [vmem:[%s3613_s30] sm:$0xff] %v2103_v19  ;;  %2136 = vst [vmem:[%s3613_s30 + $0x8] sm:$0xff] %v2104_v15  ;;  %v2114_v17 = vmul.f32 %v2690_v16, %v3501_v28  ;;  %v2115_v27 = vmul.f32 %v2690_v16, %v3507_v9  ;;  %v2116_v37 = vmul.f32 %v2690_v16, %v3513_v61 }
0x113f   : > { %2137 = vst [vmem:[%s3613_s30 + $0x10] sm:$0xff] %v2105_v18  ;;  %v2117_v54 = vmul.f32 %v2690_v16, %v3519_v4  ;;  %2138 = vst [vmem:[%s3613_s30 + $0x18] sm:$0xff] %v2106_v41  ;;  %v2118_v10 = vmul.f32 %v2690_v16, %v3525_v13  ;;  %v2119_v53 = vmul.f32 %v2690_v16, %v3531_v5 }
0x1140   : > { %2139 = vst [vmem:[%s3613_s30 + $0x20] sm:$0xff] %v2107_v21  ;;  %2140 = vst [vmem:[%s3613_s30 + $0x28] sm:$0xff] %v2108_v48  ;;  %v2120_v33 = vmul.f32 %v2690_v16, %v3537_v26  ;;  %v2121_v28 = vmul.f32 %v2690_v16, %v3543_v45  ;;  %v2122_v9 = vmul.f32 %v2690_v16, %v3549_v56 }
0x1141   : > { %2141 = vst [vmem:[%s3613_s30 + $0x30] sm:$0xff] %v2109_v20  ;;  %2142 = vst [vmem:[%s3613_s30 + $0x38] sm:$0xff] %v2110_v12  ;;  %v2123_v61 = vmul.f32 %v2690_v16, %v3555_v36  ;;  %v2124_v4 = vmul.f32 %v2690_v16, %v3561_v58  ;;  %v2125_v13 = vmul.f32 %v2690_v16, %v3567_v31 }
0x1142   : > { %2143 = vst [vmem:[%s3613_s30 + $0x40] sm:$0xff] %v2111_v24  ;;  %2144 = vst [vmem:[%s3613_s30 + $0x48] sm:$0xff] %v2112_v35  ;;  %v2126_v5 = vmul.f32 %v2690_v16, %v3573_v40  ;;  %v2127_v26 = vmul.f32 %v2690_v16, %v3579_v43  ;;  %v2128_v45 = vmul.f32 %v2690_v16, %v3585_v52 }
0x1143   : > { %2145 = vst [vmem:[%s3613_s30 + $0x50] sm:$0xff] %v2113_v49  ;;  %2146 = vst [vmem:[%s3613_s30 + $0x58] sm:$0xff] %v2114_v17  ;;  %v2129_v56 = vmul.f32 %v2690_v16, %v3588_v38  ;;  %v2130_v36 = vmul.f32 %v2690_v16, %v3591_v3  ;;  %v2131_v0 = vmul.f32 %v2690_v16, %v3594_v46 }
0x1144   : > { %2147 = vst [vmem:[%s3613_s30 + $0x60] sm:$0xff] %v2115_v27  ;;  %2148 = vst [vmem:[%s3613_s30 + $0x68] sm:$0xff] %v2116_v37  ;;  %v2133_v6 = vmul.f32 %v2690_v16, %v3597_v63  ;;  %v2134_v58 = vmul.f32 %v2690_v16, %v3600_v14 }
0x1145   : > { %2149 = vst [vmem:[%s3613_s30 + $0x70] sm:$0xff] %v2117_v54  ;;  %2150 = vst [vmem:[%s3613_s30 + $0x78] sm:$0xff] %v2118_v10 }
0x1146   : > { %2151 = vst [vmem:[%s3613_s30 + $0x80] sm:$0xff] %v2119_v53  ;;  %2152 = vst [vmem:[%s3613_s30 + $0x88] sm:$0xff] %v2120_v33 }
0x1147   : > { %2153 = vst [vmem:[%s3613_s30 + $0x90] sm:$0xff] %v2121_v28  ;;  %2154 = vst [vmem:[%s3613_s30 + $0x98] sm:$0xff] %v2122_v9 }
0x1148   : > { %2155 = vst [vmem:[%s3613_s30 + $0xa0] sm:$0xff] %v2123_v61  ;;  %2156 = vst [vmem:[%s3613_s30 + $0xa8] sm:$0xff] %v2124_v4 }
0x1149   : > { %2157 = vst [vmem:[%s3613_s30 + $0xb0] sm:$0xff] %v2125_v13  ;;  %2158 = vst [vmem:[%s3613_s30 + $0xb8] sm:$0xff] %v2126_v5 }
0x114a   : > { %2159 = vst [vmem:[%s3613_s30 + $0xc0] sm:$0xff] %v2127_v26  ;;  %2160 = vst [vmem:[%s3613_s30 + $0xc8] sm:$0xff] %v2128_v45 }
0x114b   : > { %2161 = vst [vmem:[%s3613_s30 + $0xd0] sm:$0xff] %v2129_v56  ;;  %2162 = vst [vmem:[%s3613_s30 + $0xd8] sm:$0xff] %v2130_v36 }
0x114c   : > { %2163 = vst [vmem:[%s3613_s30 + $0xe0] sm:$0xff] %v2131_v0  ;;  %2165 = vst [vmem:[%s3613_s30 + $0xf0] sm:$0xff] %v2133_v6 }
0x114d   : > { %2166 = vst [vmem:[%s3613_s30 + $0xf8] sm:$0xff] %v2134_v58 }
0x114e   : > { %2704 = shalt.err (!%p2701_p3)
}
0x114f   : > { %s2705_s25 = scalar_lea.hbm %s3660_s0, 4096  ;;  %s2709_s21 = scalar_lea.hbm %s3734_s11, 8192 }
0x1150   : > { %p2706_p4 = scmp.ne.s32.totalorder %s3660_s0, %s2705_s25  ;;  %p2710_p9 = scmp.lt.u32.totalorder %s3660_s0, %s3734_s11 }
0x1151   : > { %p2711_p10 = scmp.lt.u32.totalorder %s2709_s21, %s2705_s25  ;;  %p2713_p12 = scmp.lt.u32.totalorder %s2705_s25, %s3660_s0 }
0x1152   : > { %p2707_p7 = pnand %p2706_p4, %p2862_p5 }
0x1153   : > { %p2712_p11 = por %p2711_p10, %p2710_p9 }
0x1154   : > { %p2708_p8 = pneg %p2707_p7 }
0x1155   : > { %p2714_p13 = por %p2713_p12, %p2712_p11 }
0x1157   : > { %p2715_p0 = pnand %p2714_p13, %p2708_p8 }
0x1159   : > { %2718 = shalt.err (!%p2715_p0)
}
0x115a   : > { %s2762_s13 = smov 128   ;;  %s2763_s16 = smov 8  }
0x115b   : > { %2499 = dma.vmem_to_hbm [thread:$0]  (%p2862_p5), %s3662_s12, 4096, %s3660_s0, %s3682_s22, %s2762_s13, %s2762_s13, %s2763_s16  }
0x115c PF: > { %p2505_p1 = scmp.ge.s32.totalorder %s2753_s20, 2  ;;  %s2196_s24 = sand.u32 1, %s2741_s17  }
0x115d   : > { %s2197_s25 = scalar_lea.sflag [#allocation3], %s2196_s24 }
0x115e   : > { %p2502_p2 = pnand %p2505_p1, %p2866_p6 }
0x1160   : > { %2736 = dma.done.wait (!%p2502_p2), %s2197_s25, 4096  }
0x1161   : > { %2738 = vsyncadd (!%p2502_p2), %s2197_s25, 4294963200  ;;  %p21_p3 = scmp.ge.s32.totalorder %s2849_s23, 4   ;;  %s3747_s17 = smov %s2745_s18 }
0x1162   : > { %s3748_s18 = smov %s2749_s19  ;;  %s3749_s19 = smov %s2860_s26 }
0x1163   : > { %s3750_s20 = smov %s2849_s23  ;;  %23 = sbr.rel (!%p21_p3) target bundleno = 5 (0x5), region = 99 }
0x116a   :  { %2202 = vsyncpa [#allocation3], 1 }
0x116b   :  { %2204 = vsyncpa [#allocation3 + $0x1], 1 }

</bundles_post_ra>
